<compile_context>
chip_gen: v7x
topology: tpu7x:2x2x1
jax: 0.10.0
libtpu: 0.0.40
codegen_flags: <defaults>
</compile_context>

<pallas_src>
import jax
import jax.numpy as jnp
from jax.experimental import pallas as pl
from jax.experimental.pallas import tpu as pltpu


# ----------------------------- helpers -------------------------------------

def _round_up(v, m):
    return ((v + m - 1) // m) * m


def _choose_tj(n, attn_bytes_budget=8 << 20):
    """Largest attention-row tile TJ (dividing N, multiple of 128 when tiled) whose
    double-buffered (TJ, N) f32 output block stays within `attn_bytes_budget`."""
    cap = max(128, attn_bytes_budget // (2 * 4 * n))
    if n <= cap:
        return n
    t = (min(cap, n) // 128) * 128
    while t >= 128:
        if n % t == 0:
            return t
        t -= 128
    return n  # no nice divisor; fall back to a single tile


# ----------------------------- Pallas kernel ------------------------------

def _self_attention_kernel(x_ref, w_ref, b_ref, gamma_ref, out_ref, attn_ref):
    # x_ref    (1, C, N)    f32   all pixels of this batch element (N = H*W on lanes)
    # w_ref    (Ctot, C)    bf16  packed [Wq_pad; Wk_pad; Wv], Ctot = 2*CQP + C
    # b_ref    (Ctot, 1)    f32   packed biases (padded rows are exactly 0)
    # gamma    (1, 1)       f32
    # out_ref  (1, C, TJ)   f32
    # attn_ref (1, TJ, N)   f32
    _, c, n = x_ref.shape
    ctot = w_ref.shape[0]
    cqp = (ctot - c) // 2
    tj = out_ref.shape[2]

    x = x_ref[0]                                                   # (C, N) f32
    x_bf = x.astype(jnp.bfloat16)

    # ---- fused Q/K/V projection: one bf16 MXU pass, f32 accumulate, packed bias ----
    proj = jnp.dot(w_ref[...], x_bf,
                   preferred_element_type=jnp.float32) + b_ref[...]  # (Ctot, N) f32

    q = proj[0:cqp, :].astype(jnp.bfloat16)                        # (CQP, N)
    v = proj[2 * cqp:2 * cqp + c, :].astype(jnp.bfloat16)          # (C,  N)

    if tj == n:
        # Single j-tile per batch element: K comes straight from the fused projection.
        k_tile = proj[cqp:2 * cqp, :]                              # (CQP, N) f32
        x_tile = x                                                 # residual slice = full x
    else:
        # j-tiled path for large N: K (and the residual) only needed for this pixel tile.
        j0 = pl.multiple_of(pl.program_id(1) * tj, tj)
        x_tile = x_ref[0, :, pl.ds(j0, tj)]                        # (C, TJ) f32
        k_tile = (jnp.dot(w_ref[cqp:2 * cqp, :], x_tile.astype(jnp.bfloat16),
                          preferred_element_type=jnp.float32)
                  + b_ref[cqp:2 * cqp, :])                         # (CQP, TJ) f32

    kt = k_tile.T.astype(jnp.bfloat16)                             # (TJ, CQP) tiny transpose

    # Scores directly in attention_map layout: s[jl, i] = sum_c K[c, j0+jl] * Q[c, i] = S[i, j]
    s = jnp.dot(kt, q, preferred_element_type=jnp.float32)         # (TJ, N) f32

    # PyTorch softmax(dim=-2) over S == softmax over the last (i) axis here.
    m = jnp.max(s, axis=-1, keepdims=True)
    p = jnp.exp(s - m)
    denom = jnp.sum(p, axis=-1, keepdims=True)
    a = p * pl.reciprocal(denom, approx=True)                      # EUP vrcp (own VLIW slot)
    attn_ref[0] = a                                                # returned attention_map tile

    # o[c, j] = sum_i V[c, i] * a[jl, i]  ->  (a @ V^T)^T : both dots canonical,
    # only small (N, C)/(TJ, C) transposes, never an (N, N) one.
    vt = v.T                                                       # (N, C) bf16
    ot = jnp.dot(a.astype(jnp.bfloat16), vt,
                 preferred_element_type=jnp.float32)               # (TJ, C) f32
    o = ot.T                                                       # (C, TJ) f32

    out_ref[0] = x_tile + gamma_ref[...] * o


# ----------------------------- wrapper ------------------------------------

def self_attention_forward(x_nchw, params):
    b, c, h, w = x_nchw.shape
    n = h * w
    cq = params["wq"].shape[0]
    cqp = max(8, _round_up(cq, 8))          # pad Cq up to the 8-sublane tile
    ctot = 2 * cqp + c

    f32 = jnp.float32
    # Pack [Wq_pad; Wk_pad; Wv] -> one (Ctot, C) bf16 weight; padded rows are zero so the
    # extra Q/K channels contribute exactly 0 to the score contraction.
    w_packed = jnp.zeros((ctot, c), f32)
    w_packed = w_packed.at[0:cq, :].set(params["wq"].astype(f32))
    w_packed = w_packed.at[cqp:cqp + cq, :].set(params["wk"].astype(f32))
    w_packed = w_packed.at[2 * cqp:2 * cqp + c, :].set(params["wv"].astype(f32))
    w_packed = w_packed.astype(jnp.bfloat16)

    b_packed = jnp.zeros((ctot, 1), f32)
    b_packed = b_packed.at[0:cq, 0].set(params["bq"].astype(f32))
    b_packed = b_packed.at[cqp:cqp + cq, 0].set(params["bk"].astype(f32))
    b_packed = b_packed.at[2 * cqp:2 * cqp + c, 0].set(params["bv"].astype(f32))

    gamma = params["gamma"].reshape(1, 1).astype(f32)
    x = x_nchw.reshape(b, c, n).astype(f32)

    tj = _choose_tj(n)                       # TJ == N at small sizes; j-tiles at large H*W
    nj = n // tj

    out, attn = pl.pallas_call(
        _self_attention_kernel,
        grid=(b, nj),
        in_specs=[
            pl.BlockSpec((1, c, n), lambda i, j: (i, 0, 0)),     # x (all pixels per batch)
            pl.BlockSpec((ctot, c), lambda i, j: (0, 0)),        # packed W   (resident)
            pl.BlockSpec((ctot, 1), lambda i, j: (0, 0)),        # packed bias(resident)
            pl.BlockSpec((1, 1), lambda i, j: (0, 0)),           # gamma
        ],
        out_specs=(
            pl.BlockSpec((1, c, tj), lambda i, j: (i, 0, j)),    # out           (B, C, N)
            pl.BlockSpec((1, tj, n), lambda i, j: (i, j, 0)),    # attention_map (B, N, N)
        ),
        out_shape=(
            jax.ShapeDtypeStruct((b, c, n), f32),
            jax.ShapeDtypeStruct((b, n, n), f32),
        ),
        compiler_params=pltpu.CompilerParams(
            dimension_semantics=("parallel", "parallel")),
    )(x, w_packed, b_packed, gamma)

    return out.reshape(b, c, h, w), attn


self_attention_forward = jax.jit(self_attention_forward)


# ----------------------------- pure-JAX reference --------------------------

def self_attention_reference(x_nchw, params):
    b, c, h, w = x_nchw.shape
    n = h * w
    xf = x_nchw.reshape(b, c, n).astype(jnp.float32)
    q = jnp.einsum("oc,bcn->bon", params["wq"], xf, precision="highest") + params["bq"][None, :, None]
    k = jnp.einsum("oc,bcn->bon", params["wk"], xf, precision="highest") + params["bk"][None, :, None]
    v = jnp.einsum("oc,bcn->bon", params["wv"], xf, precision="highest") + params["bv"][None, :, None]
    s = jnp.einsum("bci,bcj->bij", q, k, precision="highest")        # S[b, i, j]
    a_t = jax.nn.softmax(s, axis=-2)                                 # softmax over i (dim=-2)
    attn = jnp.transpose(a_t, (0, 2, 1))                             # attention_map[b, j, i]
    o = jnp.einsum("bci,bij->bcj", v, a_t, precision="highest")
    out = xf + params["gamma"].reshape(1, 1, 1) * o
    return out.reshape(b, c, h, w), attn


# ----------------------------- params -------------------------------------

def init_self_attention_params(key, in_dim):
    cq = in_dim // 8
    ks = jax.random.split(key, 6)
    bound = 1.0 / float(in_dim) ** 0.5
    params = {
        "wq": jax.random.uniform(ks[0], (cq, in_dim), jnp.float32, -bound, bound),
        "bq": jax.random.uniform(ks[1], (cq,), jnp.float32, -bound, bound),
        "wk": jax.random.uniform(ks[2], (cq, in_dim), jnp.float32, -bound, bound),
        "bk": jax.random.uniform(ks[3], (cq,), jnp.float32, -bound, bound),
        "wv": jax.random.uniform(ks[4], (in_dim, in_dim), jnp.float32, -bound, bound),
        "bv": jax.random.uniform(ks[5], (in_dim,), jnp.float32, -bound, bound),
        # PyTorch initializes gamma to 0; use a nonzero value so the attention branch is exercised.
        "gamma": jnp.array([0.5], jnp.float32),
    }
    return params


# ----------------------------- main ----------------------------------------

if __name__ == "__main__":
    key = jax.random.PRNGKey(0)
    k_x, k_p = jax.random.split(key)

    batch, in_dim, hgt, wid = 2, 32, 16, 16          # small but structure-preserving (in_dim % 8 == 0)
    x = jax.random.normal(k_x, (batch, in_dim, hgt, wid), jnp.float32)
    params = init_self_attention_params(k_p, in_dim)

    out, attn = self_attention_forward(x, params)
    out = jax.block_until_ready(out)
    attn = jax.block_until_ready(attn)

    n = hgt * wid
    assert out.shape == (batch, in_dim, hgt, wid), out.shape
    assert attn.shape == (batch, n, n), attn.shape
    assert bool(jnp.all(jnp.isfinite(out)))
    assert bool(jnp.all(jnp.isfinite(attn)))
    # attention_map[b, j, :] is a softmax distribution over i -> rows sum to ~1
    # (approx-reciprocal normalizer => loose tolerance here; real check is vs. the reference).
    assert bool(jnp.allclose(attn.sum(axis=-1), 1.0, atol=1e-2))

    out_ref, attn_ref = self_attention_reference(x, params)
    assert bool(jnp.allclose(out, out_ref, rtol=1e-2, atol=1e-2))
    assert bool(jnp.allclose(attn, attn_ref, rtol=1e-2, atol=1e-2))

    print("KERNEL_OK")
</pallas_src>

<mosaic_0001>
module attributes {stable_mosaic.version = 11 : i64} {
  func.func @_self_attention_kernel(%arg0: i32, %arg1: i32, %arg2: memref<1x32x256xf32, #tpu.memory_space<vmem>>, %arg3: memref<48x32xbf16, #tpu.memory_space<vmem>>, %arg4: memref<48x1xf32, #tpu.memory_space<vmem>>, %arg5: memref<1x1xf32, #tpu.memory_space<vmem>>, %arg6: memref<1x32x256xf32, #tpu.memory_space<vmem>>, %arg7: memref<1x256x256xf32, #tpu.memory_space<vmem>>) attributes {dimension_semantics = [#tpu.dimension_semantics<parallel>, #tpu.dimension_semantics<parallel>], iteration_bounds = array<i64: 2, 1>, scalar_prefetch = 0 : i64, scratch_operands = 0 : i64, tpu.core_type = #tpu.core_type<tc>, window_params = [{transform_indices = @transform_0, window_bounds = array<i64: 1, 32, 256>}, {pipeline_mode = #tpu.pipeline_mode<synchronous>, transform_indices = @transform_1, window_bounds = array<i64: 48, 32>}, {pipeline_mode = #tpu.pipeline_mode<synchronous>, transform_indices = @transform_2, window_bounds = array<i64: 48, 1>}, {pipeline_mode = #tpu.pipeline_mode<synchronous>, transform_indices = @transform_3, window_bounds = array<i64: 1, 1>}, {transform_indices = @transform_4, window_bounds = array<i64: 1, 32, 256>}, {transform_indices = @transform_5, window_bounds = array<i64: 1, 256, 256>}]} {
    %c0 = arith.constant 0 : index
    %c0_0 = arith.constant 0 : index
    %c0_1 = arith.constant 0 : index
    %0 = vector.load %arg2[%c0, %c0_0, %c0_1] : memref<1x32x256xf32, #tpu.memory_space<vmem>>, vector<1x32x256xf32>
    %1 = vector.shape_cast %0 : vector<1x32x256xf32> to vector<32x256xf32>
    %2 = arith.truncf %1 : vector<32x256xf32> to vector<32x256xbf16>
    %c0_2 = arith.constant 0 : index
    %c0_3 = arith.constant 0 : index
    %3 = vector.load %arg3[%c0_2, %c0_3] : memref<48x32xbf16, #tpu.memory_space<vmem>>, vector<48x32xbf16>
    %cst = arith.constant dense<0.000000e+00> : vector<48x256xf32>
    %4 = tpu.matmul %3, %2, %cst {dimension_numbers = #tpu.dot_dimension_numbers<[1], [0], [0], [1], [0, 0, 1, 1], [], []>} : vector<48x32xbf16>, vector<32x256xbf16>, vector<48x256xf32> -> vector<48x256xf32>
    %c0_4 = arith.constant 0 : index
    %c0_5 = arith.constant 0 : index
    %5 = vector.load %arg4[%c0_4, %c0_5] : memref<48x1xf32, #tpu.memory_space<vmem>>, vector<48x1xf32>
    %6 = vector.broadcast %5 : vector<48x1xf32> to vector<48x256xf32>
    %7 = arith.addf %4, %6 : vector<48x256xf32>
    %8 = vector.extract_strided_slice %7 {offsets = [0, 0], sizes = [8, 256], strides = [1, 1]} : vector<48x256xf32> to vector<8x256xf32>
    %9 = arith.truncf %8 : vector<8x256xf32> to vector<8x256xbf16>
    %10 = vector.extract_strided_slice %7 {offsets = [16, 0], sizes = [32, 256], strides = [1, 1]} : vector<48x256xf32> to vector<32x256xf32>
    %11 = arith.truncf %10 : vector<32x256xf32> to vector<32x256xbf16>
    %12 = vector.extract_strided_slice %7 {offsets = [8, 0], sizes = [8, 256], strides = [1, 1]} : vector<48x256xf32> to vector<8x256xf32>
    %13 = tpu.transpose %12, [1, 0] : vector<8x256xf32> -> vector<256x8xf32>
    %14 = arith.truncf %13 : vector<256x8xf32> to vector<256x8xbf16>
    %cst_6 = arith.constant dense<0.000000e+00> : vector<256x256xf32>
    %15 = tpu.matmul %14, %9, %cst_6 {dimension_numbers = #tpu.dot_dimension_numbers<[1], [0], [0], [1], [0, 0, 1, 1], [], []>} : vector<256x8xbf16>, vector<8x256xbf16>, vector<256x256xf32> -> vector<256x256xf32>
    %cst_7 = arith.constant dense<0xFF800000> : vector<256xf32>
    %16 = vector.multi_reduction <maximumf>, %15, %cst_7 [1] : vector<256x256xf32> to vector<256xf32>
    %17 = vector.shape_cast %16 : vector<256xf32> to vector<256x1xf32>
    %18 = vector.broadcast %17 : vector<256x1xf32> to vector<256x256xf32>
    %19 = arith.subf %15, %18 : vector<256x256xf32>
    %20 = math.exp %19 : vector<256x256xf32>
    %cst_8 = arith.constant dense<0.000000e+00> : vector<256xf32>
    %21 = vector.multi_reduction <add>, %20, %cst_8 [1] : vector<256x256xf32> to vector<256xf32>
    %22 = vector.shape_cast %21 : vector<256xf32> to vector<256x1xf32>
    %23 = tpu.reciprocal %22 {approx = true} : vector<256x1xf32> -> vector<256x1xf32>
    %24 = vector.broadcast %23 : vector<256x1xf32> to vector<256x256xf32>
    %25 = arith.mulf %20, %24 : vector<256x256xf32>
    %c0_9 = arith.constant 0 : index
    %c0_10 = arith.constant 0 : index
    %c0_11 = arith.constant 0 : index
    %26 = vector.load %arg7[%c0_9, %c0_10, %c0_11] : memref<1x256x256xf32, #tpu.memory_space<vmem>>, vector<1x256x256xf32>
    %27 = vector.shape_cast %26 : vector<1x256x256xf32> to vector<256x256xf32>
    %28 = vector.shape_cast %25 : vector<256x256xf32> to vector<1x256x256xf32>
    tpu.vector_store %arg7[%c0_9, %c0_10, %c0_11], %28 {strides = array<i32>} : memref<1x256x256xf32, #tpu.memory_space<vmem>>, vector<1x256x256xf32>,
    %29 = tpu.transpose %11, [1, 0] : vector<32x256xbf16> -> vector<256x32xbf16>
    %30 = arith.truncf %25 : vector<256x256xf32> to vector<256x256xbf16>
    %cst_12 = arith.constant dense<0.000000e+00> : vector<256x32xf32>
    %31 = tpu.matmul %30, %29, %cst_12 {dimension_numbers = #tpu.dot_dimension_numbers<[1], [0], [0], [1], [0, 0, 1, 1], [], []>} : vector<256x256xbf16>, vector<256x32xbf16>, vector<256x32xf32> -> vector<256x32xf32>
    %32 = tpu.transpose %31, [1, 0] : vector<256x32xf32> -> vector<32x256xf32>
    %c0_13 = arith.constant 0 : index
    %c0_14 = arith.constant 0 : index
    %33 = vector.load %arg5[%c0_13, %c0_14] : memref<1x1xf32, #tpu.memory_space<vmem>>, vector<1x1xf32>
    %34 = vector.broadcast %33 : vector<1x1xf32> to vector<32x256xf32>
    %35 = arith.mulf %34, %32 : vector<32x256xf32>
    %36 = arith.addf %1, %35 : vector<32x256xf32>
    %c0_15 = arith.constant 0 : index
    %c0_16 = arith.constant 0 : index
    %c0_17 = arith.constant 0 : index
    %37 = vector.load %arg6[%c0_15, %c0_16, %c0_17] : memref<1x32x256xf32, #tpu.memory_space<vmem>>, vector<1x32x256xf32>
    %38 = vector.shape_cast %37 : vector<1x32x256xf32> to vector<32x256xf32>
    %39 = vector.shape_cast %36 : vector<32x256xf32> to vector<1x32x256xf32>
    tpu.vector_store %arg6[%c0_15, %c0_16, %c0_17], %39 {strides = array<i32>} : memref<1x32x256xf32, #tpu.memory_space<vmem>>, vector<1x32x256xf32>,
    return
  }
  func.func @transform_0(%arg0: i32, %arg1: i32) -> (i32, i32, i32) {
    %c0_i32 = arith.constant 0 : i32
    %c0_i32_0 = arith.constant 0 : i32
    %c0_i32_1 = arith.constant 0 : i32
    return %arg0, %c0_i32, %c0_i32_0 : i32, i32, i32
  }
  func.func @transform_1(%arg0: i32, %arg1: i32) -> (i32, i32) {
    %c0_i32 = arith.constant 0 : i32
    %c0_i32_0 = arith.constant 0 : i32
    %c0_i32_1 = arith.constant 0 : i32
    return %c0_i32, %c0_i32_0 : i32, i32
  }
  func.func @transform_2(%arg0: i32, %arg1: i32) -> (i32, i32) {
    %c0_i32 = arith.constant 0 : i32
    %c0_i32_0 = arith.constant 0 : i32
    %c0_i32_1 = arith.constant 0 : i32
    return %c0_i32, %c0_i32_0 : i32, i32
  }
  func.func @transform_3(%arg0: i32, %arg1: i32) -> (i32, i32) {
    %c0_i32 = arith.constant 0 : i32
    %c0_i32_0 = arith.constant 0 : i32
    %c0_i32_1 = arith.constant 0 : i32
    return %c0_i32, %c0_i32_0 : i32, i32
  }
  func.func @transform_4(%arg0: i32, %arg1: i32) -> (i32, i32, i32) {
    %c0_i32 = arith.constant 0 : i32
    %c0_i32_0 = arith.constant 0 : i32
    return %arg0, %c0_i32, %arg1 : i32, i32, i32
  }
  func.func @transform_5(%arg0: i32, %arg1: i32) -> (i32, i32, i32) {
    %c0_i32 = arith.constant 0 : i32
    %c0_i32_0 = arith.constant 0 : i32
    return %arg0, %arg1, %c0_i32 : i32, i32, i32
  }
}

</mosaic_0001>

<bundles_post_ra>
// kernel: self_attention_forward.1
= control target key start
LH: loop header
LB: loop body
LE: loop exit
PB: predicated region body
PF: predicated region fallthrough
CT: control target
= control target key end

     0   :  { %s3068_s0 = inlined_call_operand.vmem [shape: f32[2,32,256], index: 0, kind: input, shape index: {}]   ;;  %s3069_s1 = inlined_call_operand.vmem [shape: bf16[48,32], index: 1, kind: input, shape index: {}]   ;;  %s3070_s2 = inlined_call_operand.vmem [shape: f32[48,1], index: 2, kind: input, shape index: {}]   ;;  %s3071_s3 = inlined_call_operand.<no memory space> [shape: f32[1,1], index: 3, kind: input, shape index: {}]   ;;  %s3072_s4 = inlined_call_operand.vmem [shape: f32[2,32,256], index: 4, kind: output, shape index: {0}]   ;;  %s3073_s5 = inlined_call_operand.hbm [shape: f32[2,256,256], index: 5, kind: output, shape index: {1}]  }
   0x1   :  { %v11_v0 = vstv %s3071_s3 }
   0x2   :  { %12 = vst [vmem:[#allocation2] sm:$0x1] %v11_v0 }
   0x3   :  { %13 = vsyncpa [#allocation4], 0 }
   0x4   :  { %15 = vsyncpa [#allocation4 + $0x1], 0  ;;  %s2144_s20 = smov 0   ;;  %s2146_s21 = smov 0  }
   0x5   :  { %s2148_s22 = smov 0   ;;  %s2150_s23 = smov 0  }
   0x6   :  { %s2152_s24 = smov 0   ;;  %s2154_s25 = smov 0  }
   0x7 LB: > { %s1717_s3 = sadd.s32 4294967295, %s2105_s25   ;;  %s1718_s26 = sadd.s32 4294967294, %s2105_s25   ;;  %s2105_s25 = sphi %s2154_s25, %s21_s25   ;;  %s2101_s24 = sphi %s2152_s24, %s3175_s24   ;;  %s2097_s23 = sphi %s2150_s23, %s3174_s23   ;;  %s2093_s22 = sphi %s2148_s22, %s3173_s22   ;;  %s2089_s21 = sphi %s2146_s21, %s3172_s21   ;;  %s2085_s20 = sphi %s2144_s20, %s3171_s20  }
   0x8   : > { %s33_s27 = sadd.s32 1, %s2101_s24  ;;  %s159_s28 = sadd.s32 1, %s2093_s22 }
   0x9   : > { %p35_p0 = scmp.ge.s32.totalorder %s33_s27, 2  ;;  %p169_p1 = scmp.ne.s32.totalorder %s2093_s22, %s2089_s21 }
   0xa   : > { %p170_p2 = scmp.eq.s32.totalorder %s1717_s3, 1  ;;  %p175_p3 = scmp.ne.s32.totalorder %s2089_s21, %s2085_s20 }
   0xb   : > { %s3177_s27 = smov (%p35_p0, %s33_s27), 0  ;;  %p176_p5 = scmp.eq.s32.totalorder %s1718_s26, 1 }
   0xc   : > { %p2184_p4 = por %p170_p2, %p169_p1  ;;  %s154_s30 = ssub.s32 %s2101_s24, %s3177_s27 }
   0xd   : > { %p1721_p6 = scmp.ge.s32.totalorder %s2105_s25, 1  ;;  %p157_p7 = scmp.eq.s32.totalorder %s154_s30, 0 }
   0xe   : > { %p2191_p8 = por %p176_p5, %p175_p3  ;;  %p211_p9 = scmp.lt.s32.totalorder %s2105_s25, 3 }
   0xf   : > { %s2197_s7 = scalar_select %p157_p7, %s2093_s22, %s159_s28  }
  0x10   : > { %p212_p10 = pnand %p1721_p6, %p211_p9 }
  0x12   : > { %215 = sbr.rel (%p212_p10) target bundleno = 1461 (0x5b5), region = 36 }
  0x19   : > { %p248_p11 = scmp.lt.s32.totalorder %s2097_s23, 1  ;;  %v2107_v1 = vmov 0   ;;  %v284_v2 = vld [vmem:[%s3070_s2 + $0x8] sm:$0xff]  ;;  %v283_v3 = vld [vmem:[%s3070_s2] sm:$0xff]  ;;  %v285_v15 = vld [vmem:[%s3070_s2 + $0x10] sm:$0xff]  ;;  %vm334_vm0 = vcmask 261120  }
  0x1a   : > { %376 = vmatprep.mubr.bf16.mxu0 %v2107_v1  ;;  %1822 = vset.pattern.permute.xlu0 %v2107_v1  ;;  %v286_v17 = vld [vmem:[%s3070_s2 + $0x18] sm:$0xff]  ;;  %v1824_v18 = vld [vmem:[%s3069_s1] sm:$0xff]   ;;  %v1825_v19 = vld [vmem:[%s3069_s1 + $0x8] sm:$0xff]   ;;  %vm542_vm1 = vcmask 1043456   ;;  %vm493_vm2 = vcmask 64512   ;;  %s245_s18 = sand.u32 1, %s2089_s21  }
  0x1b   : > { %s2203_s8 = scalar_select %p248_p11, %s2097_s23, 1  ;;  %396 = vmatprep.mubr.bf16.mxu1 %v2107_v1  ;;  %296 = vperm.xlu0 %1822, %v284_v2   ;;  %v1826_v20 = vld [vmem:[%s3069_s1 + $0x10] sm:$0xff]  }
  0x1c   : > { %s1722_s19 = sshll.u32 %s245_s18, 9  ;;  %s3010_s13 = scalar_lea.sflag [#allocation4], %s245_s18 }
  0x1d   : > { %s1756_s11 = sshll.u32 %s2203_s8, 6  ;;  %s2752_s3 = scalar_lea.vmem [#allocation3], %s1722_s19 }
  0x1e   : > { %s2218_s16 = scalar_lea.vmem %s3068_s0, %s1756_s11  ;;  %s2986_s30 = scalar_lea.vmem %s3072_s4, %s1756_s11 }
  0x1f   : > { %v266_v4 = vld [vmem:[%s2218_s16 + $0x8] sm:$0xff]  ;;  %v268_v5 = vld [vmem:[%s2218_s16 + $0x18] sm:$0xff]  ;;  %v265_v6 = vld [vmem:[%s2218_s16] sm:$0xff]  ;;  %291 = vperm.xlu0 %1822, %v283_v3   ;;  %s1758_s8 = sshll.u32 %s2097_s23, 13  ;;  %s1607_s12 = sshll.u32 %s2752_s3, 4  ;;  %s3006_s12 = int_to_ptr.vmem [resolvable:$true] %s1607_s12 }
  0x20   : > { %v274_v7 = vpack.c.bf16 %v268_v5, %v266_v4  ;;  %v267_v8 = vld [vmem:[%s2218_s16 + $0x10] sm:$0xff]  ;;  %v270_v9 = vld [vmem:[%s2218_s16 + $0x28] sm:$0xff]  ;;  %v272_v10 = vld [vmem:[%s2218_s16 + $0x38] sm:$0xff]  ;;  %s3003_s10 = scalar_lea.hbm %s3073_s5, %s1758_s8  ;;  %s2027_s14 = scalar_lea.vmem %s3006_s12, 8192 }
  0x21   : > { %v273_v11 = vpack.c.bf16 %v267_v8, %v265_v6  ;;  %v276_v12 = vpack.c.bf16 %v272_v10, %v270_v9  ;;  %v269_v13 = vld [vmem:[%s2218_s16 + $0x20] sm:$0xff]  ;;  %v271_v14 = vld [vmem:[%s2218_s16 + $0x30] sm:$0xff]  ;;  %p2028_p12 = scmp.ne.s32.totalorder %s3006_s12, %s2027_s14  ;;  %s2108_s23 = smov [#allocation3]  }
  0x22   : > { %344 = vmatprep.subr.bf16.mxu0 %v274_v7  ;;  %1759 = vmatprep.subr.bf16.mxu1 %v274_v7  ;;  %v275_v16 = vpack.c.bf16 %v271_v14, %v269_v13  ;;  %s2031_s15 = sshll.u32 %s2108_s23, 4  ;;  %s2032_s15 = int_to_ptr.vmem [resolvable:$false] %s2031_s15 }
  0x23   : > { %345 = vmatpush1.bf16.msra.mxu0 %v273_v11  ;;  %1761 = vmatpush1.bf16.msra.mxu1 %v273_v11  ;;  %p2029_p13 = pnand %p2028_p12, %p2184_p4  ;;  %s2033_s17 = scalar_lea.vmem %s2032_s15, 16384 }
  0x24   : > { %346 = vmatprep.subr.bf16.mxu0 %v276_v12  ;;  %301 = vperm.xlu0 %1822, %v285_v15   ;;  %p2034_p1 = scmp.lt.s32.totalorder %s3006_s12, %s2032_s15  ;;  %p2035_p2 = scmp.lt.s32.totalorder %s2033_s17, %s2027_s14 }
  0x25   : > { %1760 = vmatprep.subr.bf16.mxu1 %v276_v12  ;;  %p2030_p0 = pneg %p2029_p13 }
  0x26   : > { %p2036_p3 = por %p2035_p2, %p2034_p1 }
  0x27   : > { %347 = vmatpush1.bf16.msra.mxu0 %v275_v16  ;;  %1762 = vmatpush1.bf16.msra.mxu1 %v275_v16 }
  0x28   : > { %306 = vperm.xlu0 %1822, %v286_v17   ;;  %p2037_p5 = pnand %p2036_p3, %p2030_p0 }
  0x2a   : > { %1730 = vmatmul.mubr.msk.bf16.vlgmr.msra.gmra.mrb[0].mxu0 %vm334_vm0, %v1824_v18  ;;  %1732 = vmatmul.mubr.msk.bf16.vlgmr.msra.gmra.mrb[0].mxu1 %vm334_vm0, %v1826_v20 }
  0x2b   : > { %386 = vmatprep.mubr.bf16.mxu0 %v2107_v1  ;;  %581 = vmatprep.mubr.bf16.mxu1 %v2107_v1 }
  0x32   : > { %1731 = vmatmul.mubr.msk.bf16.gmra.mrb[4].mxu0 %vm334_vm0, %v1825_v19 }
  0x9a   : > { %v297_v21 = vpop.permute.xlu0 %296 }
  0x9e   : > { %v292_v22 = vpop.permute.xlu0 %291 }
  0xa3   : > { %v302_v31 = vpop.permute.xlu0 %301 }
  0xa7   : > { %v307_v37 = vpop.permute.xlu0 %306 }
  0xfd   : > { %v378_v23 = vpop.f32.mrb[0].mxu0  ;;  %v2246_v46 = vpop.f32.mrb[0].mxu1 }
  0xfe   : > { %v379_v24 = vadd.f32 %v378_v23, %v292_v22  ;;  %v380_v25 = vpop.f32.mrb[1].mxu0  ;;  %v2248_v48 = vpop.f32.mrb[1].mxu1 }
  0xff   : > { %v381_v26 = vadd.f32 %v380_v25, %v292_v22  ;;  %v382_v27 = vpop.f32.mrb[2].mxu0  ;;  %v2250_v49 = vpop.f32.mrb[2].mxu1 }
 0x100   : > { %v407_v28 = vpack.c.bf16 %v379_v24, %v379_v24  ;;  %v384_v29 = vpop.f32.mrb[3].mxu0  ;;  %v383_v30 = vadd.f32 %v382_v27, %v297_v21  ;;  %3105 = vst [vmem:[#allocation6_spill] sm:$0xff] %v2250_v49  ;;  %v2252_v50 = vpop.f32.mrb[3].mxu1 }
 0x101   : > { %v408_v32 = vpack.c.bf16 %v381_v26, %v381_v26  ;;  %v385_v33 = vadd.f32 %v384_v29, %v297_v21  ;;  %3106 = vst [vmem:[#allocation7_spill] sm:$0xff] %v2252_v50 }
 0x102   : > { %v544_v34 = vsel %vm542_vm1, %v407_v28, 0  ;;  %413 = vxpose.xlu1.b32.start.end [1/1] (short) %v383_v30, 128 }
 0x103   : > { %1733 = vmatprep.subr.msk.bf16.mxu1 %vm542_vm1, %v408_v32 }
 0x104   : > { %550 = vmatpush1.bf16.msra.mxu1 %v544_v34 }
 0x105   : > { %v388_v35 = vpop.f32.mrb[4].mxu0 }
 0x106   : > { %v390_v36 = vpop.f32.mrb[5].mxu0  ;;  %v389_v39 = vadd.f32 %v388_v35, %v302_v31 }
 0x107   : > { %v392_v38 = vpop.f32.mrb[6].mxu0  ;;  %v391_v42 = vadd.f32 %v390_v36, %v302_v31 }
 0x108   : > { %v393_v40 = vadd.f32 %v392_v38, %v307_v37  ;;  %v394_v41 = vpop.f32.mrb[7].mxu0 }
 0x109   : > { %v395_v43 = vadd.f32 %v394_v41, %v307_v37 }
 0x10a   : > { %v409_v44 = vpack.c.bf16 %v393_v40, %v389_v39 }
 0x10b   : > { %v410_v45 = vpack.c.bf16 %v395_v43, %v391_v42 }
 0x10d   : > { %1318 = vmatprep.subr.bf16.mxu0 %v410_v45 }
 0x10e   : > { %1319 = vmatpush1.bf16.xpose.msra.mxu0 %v409_v44 }
 0x13f   : > { %445 = vxpose.xlu1.b32.start.end [1/1] (short) %v385_v33, 128 }
 0x15d   : > { %1823 = vset.pattern.permute.xlu1 %v2107_v1 }
 0x182   : > { %v429_v47 = vpop.trf.xlu1 }
 0x186   : > { %v430_v51 = vpop.trf.xlu1 }
 0x187   : > { %v477_v52 = vpack.c.bf16 %v430_v51, %v429_v47 }
 0x189   : > { %1734 = vmatmul.mubr.msk.bf16.vlgmr.msra.gmra.mrb[4].mxu1 %vm493_vm2, %v477_v52 }
 0x18a   : > { %v431_v53 = vpop.trf.xlu1  ;;  %591 = vmatprep.mubr.bf16.mxu1 %v2107_v1 }
 0x18e   : > { %v432_v54 = vpop.trf.xlu1 }
 0x18f   : > { %v478_v55 = vpack.c.bf16 %v432_v54, %v431_v53 }
 0x191   : > { %1735 = vmatmul.mubr.msk.bf16.gmra.mrb[8].mxu1 %vm493_vm2, %v478_v55 }
 0x192   : > { %v433_v56 = vpop.trf.xlu1  ;;  %601 = vmatprep.mubr.bf16.mxu1 %v2107_v1 }
 0x196   : > { %v434_v57 = vpop.trf.xlu1 }
 0x197   : > { %v479_v58 = vpack.c.bf16 %v434_v57, %v433_v56 }
 0x199   : > { %1736 = vmatmul.mubr.msk.bf16.gmra.mrb[12].mxu1 %vm493_vm2, %v479_v58 }
 0x19a   : > { %v435_v59 = vpop.trf.xlu1  ;;  %611 = vmatprep.mubr.bf16.mxu1 %v2107_v1 }
 0x19e   : > { %v436_v60 = vpop.trf.xlu1 }
 0x19f   : > { %v480_v61 = vpack.c.bf16 %v436_v60, %v435_v59 }
 0x1a1   : > { %1737 = vmatmul.mubr.msk.bf16.gmra.mrb[16].mxu1 %vm493_vm2, %v480_v61 }
 0x1a2   : > { %v437_v62 = vpop.trf.xlu1  ;;  %621 = vmatprep.mubr.bf16.mxu1 %v2107_v1 }
 0x1a6   : > { %v438_v63 = vpop.trf.xlu1 }
 0x1a7   : > { %v481_v0 = vpack.c.bf16 %v438_v63, %v437_v62 }
 0x1a9   : > { %1738 = vmatmul.mubr.msk.bf16.gmra.mrb[20].mxu1 %vm493_vm2, %v481_v0 }
 0x1aa   : > { %v439_v2 = vpop.trf.xlu1  ;;  %631 = vmatprep.mubr.bf16.mxu1 %v2107_v1 }
 0x1ae   : > { %v440_v3 = vpop.trf.xlu1 }
 0x1af   : > { %v482_v4 = vpack.c.bf16 %v440_v3, %v439_v2 }
 0x1b1   : > { %1739 = vmatmul.mubr.msk.bf16.gmra.mrb[24].mxu1 %vm493_vm2, %v482_v4 }
 0x1b2   : > { %v441_v5 = vpop.trf.xlu1  ;;  %641 = vmatprep.mubr.bf16.mxu1 %v2107_v1 }
 0x1b6   : > { %v442_v6 = vpop.trf.xlu1 }
 0x1b7   : > { %v483_v7 = vpack.c.bf16 %v442_v6, %v441_v5 }
 0x1b9   : > { %1740 = vmatmul.mubr.msk.bf16.gmra.mrb[28].mxu1 %vm493_vm2, %v483_v7 }
 0x1ba   : > { %v443_v8 = vpop.trf.xlu1  ;;  %651 = vmatprep.mubr.bf16.mxu1 %v2107_v1 }
 0x1be   : > { %v444_v9 = vpop.trf.xlu1 }
 0x1bf   : > { %v484_v10 = vpack.c.bf16 %v444_v9, %v443_v8 }
 0x1c1   : > { %1741 = vmatmul.mubr.msk.bf16.gmra.mrb[32].mxu1 %vm493_vm2, %v484_v10 }
 0x1c2   : > { %v461_v11 = vpop.trf.xlu1  ;;  %661 = vmatprep.mubr.bf16.mxu1 %v2107_v1 }
 0x1c6   : > { %v462_v12 = vpop.trf.xlu1 }
 0x1c7   : > { %v485_v13 = vpack.c.bf16 %v462_v12, %v461_v11 }
 0x1c9   : > { %1742 = vmatmul.mubr.msk.bf16.gmra.mrb[36].mxu1 %vm493_vm2, %v485_v13 }
 0x1ca   : > { %v463_v14 = vpop.trf.xlu1  ;;  %671 = vmatprep.mubr.bf16.mxu1 %v2107_v1 }
 0x1ce   : > { %v464_v15 = vpop.trf.xlu1 }
 0x1cf   : > { %v486_v16 = vpack.c.bf16 %v464_v15, %v463_v14  ;;  %v287_v15 = vld [vmem:[%s3070_s2 + $0x20] sm:$0xff] }
 0x1d1   : > { %1743 = vmatmul.mubr.msk.bf16.gmra.mrb[40].mxu1 %vm493_vm2, %v486_v16 }
 0x1d2   : > { %v465_v17 = vpop.trf.xlu1  ;;  %681 = vmatprep.mubr.bf16.mxu1 %v2107_v1 }
 0x1d6   : > { %v466_v18 = vpop.trf.xlu1 }
 0x1d7   : > { %v487_v19 = vpack.c.bf16 %v466_v18, %v465_v17 }
 0x1d9   : > { %1744 = vmatmul.mubr.msk.bf16.gmra.mrb[44].mxu1 %vm493_vm2, %v487_v19 }
 0x1da   : > { %v467_v20 = vpop.trf.xlu1  ;;  %691 = vmatprep.mubr.bf16.mxu1 %v2107_v1 }
 0x1de   : > { %v468_v21 = vpop.trf.xlu1 }
 0x1df   : > { %v488_v22 = vpack.c.bf16 %v468_v21, %v467_v20 }
 0x1e1   : > { %1745 = vmatmul.mubr.msk.bf16.gmra.mrb[48].mxu1 %vm493_vm2, %v488_v22 }
 0x1e2   : > { %v469_v23 = vpop.trf.xlu1  ;;  %701 = vmatprep.mubr.bf16.mxu1 %v2107_v1 }
 0x1e6   : > { %v470_v24 = vpop.trf.xlu1 }
 0x1e7   : > { %v489_v25 = vpack.c.bf16 %v470_v24, %v469_v23 }
 0x1e9   : > { %1746 = vmatmul.mubr.msk.bf16.gmra.mrb[52].mxu1 %vm493_vm2, %v489_v25 }
 0x1ea   : > { %v471_v26 = vpop.trf.xlu1  ;;  %711 = vmatprep.mubr.bf16.mxu1 %v2107_v1 }
 0x1ee   : > { %v472_v27 = vpop.trf.xlu1 }
 0x1ef   : > { %v490_v28 = vpack.c.bf16 %v472_v27, %v471_v26 }
 0x1f1   : > { %1747 = vmatmul.mubr.msk.bf16.gmra.mrb[56].mxu1 %vm493_vm2, %v490_v28 }
 0x1f2   : > { %v473_v29 = vpop.trf.xlu1  ;;  %721 = vmatprep.mubr.bf16.mxu1 %v2107_v1 }
 0x1f6   : > { %v474_v30 = vpop.trf.xlu1 }
 0x1f7   : > { %v491_v31 = vpack.c.bf16 %v474_v30, %v473_v29 }
 0x1f9   : > { %1748 = vmatmul.mubr.msk.bf16.gmra.mrb[60].mxu1 %vm493_vm2, %v491_v31 }
 0x1fa   : > { %v475_v32 = vpop.trf.xlu1  ;;  %731 = vmatprep.mubr.bf16.mxu1 %v2107_v1 }
 0x1fe   : > { %v476_v33 = vpop.trf.xlu1 }
 0x1ff   : > { %v492_v34 = vpack.c.bf16 %v476_v33, %v475_v32 }
 0x201   : > { %1749 = vmatmul.mubr.msk.bf16.gmra.mrb[64].mxu1 %vm493_vm2, %v492_v34 }
 0x25c   : > { %v2285_v35 = vpop.f32.mrb[4].mxu1 }
 0x25d   : > { %v2287_v36 = vpop.f32.mrb[5].mxu1 }
 0x25e   : > { %v2289_v37 = vpop.f32.mrb[6].mxu1  ;;  %v742_v38 = vmax.f32 %v2285_v35, %v2287_v36 }
 0x25f   : > { %v2293_v39 = vpop.f32.mrb[7].mxu1 }
 0x260   : > { %743 = vmax.xlane.f32.xlu0 %v742_v38  ;;  %v745_v40 = vmax.f32 %v2289_v37, %v2293_v39 }
 0x264   : > { %746 = vmax.xlane.f32.xlu0 %v745_v40  ;;  %v2297_v1 = vpop.f32.mrb[8].mxu1 }
 0x265   : > { %v2299_v41 = vpop.f32.mrb[9].mxu1 }
 0x266   : > { %v748_v42 = vmax.f32 %v2297_v1, %v2299_v41  ;;  %v2303_v43 = vpop.f32.mrb[10].mxu1 }
 0x267   : > { %v2305_v44 = vpop.f32.mrb[11].mxu1 }
 0x268   : > { %749 = vmax.xlane.f32.xlu0 %v748_v42  ;;  %v751_v45 = vmax.f32 %v2303_v43, %v2305_v44 }
 0x26c   : > { %752 = vmax.xlane.f32.xlu0 %v751_v45  ;;  %v2309_v47 = vpop.f32.mrb[12].mxu1 }
 0x26d   : > { %v2311_v51 = vpop.f32.mrb[13].mxu1 }
 0x26e   : > { %v754_v52 = vmax.f32 %v2309_v47, %v2311_v51  ;;  %v2315_v53 = vpop.f32.mrb[14].mxu1 }
 0x26f   : > { %v2317_v54 = vpop.f32.mrb[15].mxu1 }
 0x270   : > { %755 = vmax.xlane.f32.xlu0 %v754_v52  ;;  %v757_v55 = vmax.f32 %v2315_v53, %v2317_v54 }
 0x274   : > { %758 = vmax.xlane.f32.xlu0 %v757_v55  ;;  %v2321_v56 = vpop.f32.mrb[16].mxu1 }
 0x275   : > { %v2323_v57 = vpop.f32.mrb[17].mxu1 }
 0x276   : > { %v760_v58 = vmax.f32 %v2321_v56, %v2323_v57  ;;  %v2327_v59 = vpop.f32.mrb[18].mxu1 }
 0x277   : > { %v2329_v60 = vpop.f32.mrb[19].mxu1 }
 0x278   : > { %761 = vmax.xlane.f32.xlu0 %v760_v58  ;;  %v763_v61 = vmax.f32 %v2327_v59, %v2329_v60 }
 0x27c   : > { %764 = vmax.xlane.f32.xlu0 %v763_v61  ;;  %v2333_v62 = vpop.f32.mrb[20].mxu1 }
 0x27d   : > { %v2335_v63 = vpop.f32.mrb[21].mxu1 }
 0x27e   : > { %v2337_v0 = vpop.f32.mrb[22].mxu1  ;;  %v766_v2 = vmax.f32 %v2333_v62, %v2335_v63 }
 0x27f   : > { %v2341_v3 = vpop.f32.mrb[23].mxu1 }
 0x280   : > { %767 = vmax.xlane.f32.xlu1 %v766_v2  ;;  %v769_v4 = vmax.f32 %v2337_v0, %v2341_v3 }
 0x282   : > { %770 = vmax.xlane.f32.xlu0 %v769_v4 }
 0x284   : > { %v2345_v5 = vpop.f32.mrb[24].mxu1 }
 0x285   : > { %v2347_v6 = vpop.f32.mrb[25].mxu1 }
 0x286   : > { %v772_v7 = vmax.f32 %v2345_v5, %v2347_v6  ;;  %v2351_v8 = vpop.f32.mrb[26].mxu1 }
 0x287   : > { %v2353_v9 = vpop.f32.mrb[27].mxu1 }
 0x288   : > { %773 = vmax.xlane.f32.xlu0 %v772_v7  ;;  %v775_v10 = vmax.f32 %v2351_v8, %v2353_v9 }
 0x28c   : > { %776 = vmax.xlane.f32.xlu0 %v775_v10  ;;  %v2357_v11 = vpop.f32.mrb[28].mxu1 }
 0x28d   : > { %v2359_v12 = vpop.f32.mrb[29].mxu1 }
 0x28e   : > { %v778_v13 = vmax.f32 %v2357_v11, %v2359_v12  ;;  %v2363_v14 = vpop.f32.mrb[30].mxu1 }
 0x28f   : > { %v2368_v16 = vpop.f32.mrb[31].mxu1 }
 0x290   : > { %779 = vmax.xlane.f32.xlu0 %v778_v13  ;;  %v781_v17 = vmax.f32 %v2363_v14, %v2368_v16 }
 0x291   : > { %311 = vperm.xlu1 %1823, %v287_v15  }
 0x294   : > { %782 = vmax.xlane.f32.xlu0 %v781_v17  ;;  %v2372_v18 = vpop.f32.mrb[32].mxu1 }
 0x295   : > { %v2374_v19 = vpop.f32.mrb[33].mxu1 }
 0x296   : > { %v784_v20 = vmax.f32 %v2372_v18, %v2374_v19  ;;  %v2378_v21 = vpop.f32.mrb[34].mxu1 }
 0x297   : > { %v2380_v22 = vpop.f32.mrb[35].mxu1 }
 0x298   : > { %785 = vmax.xlane.f32.xlu0 %v784_v20  ;;  %v787_v23 = vmax.f32 %v2378_v21, %v2380_v22 }
 0x29c   : > { %788 = vmax.xlane.f32.xlu0 %v787_v23  ;;  %v2384_v24 = vpop.f32.mrb[36].mxu1 }
 0x29d   : > { %v2386_v25 = vpop.f32.mrb[37].mxu1 }
 0x29e   : > { %v790_v26 = vmax.f32 %v2384_v24, %v2386_v25  ;;  %v2390_v27 = vpop.f32.mrb[38].mxu1 }
 0x29f   : > { %v2392_v28 = vpop.f32.mrb[39].mxu1 }
 0x2a0   : > { %791 = vmax.xlane.f32.xlu0 %v790_v26  ;;  %v793_v29 = vmax.f32 %v2390_v27, %v2392_v28 }
 0x2a4   : > { %794 = vmax.xlane.f32.xlu0 %v793_v29  ;;  %v2396_v30 = vpop.f32.mrb[40].mxu1 }
 0x2a5   : > { %v2398_v31 = vpop.f32.mrb[41].mxu1 }
 0x2a6   : > { %v796_v32 = vmax.f32 %v2396_v30, %v2398_v31  ;;  %v2402_v33 = vpop.f32.mrb[42].mxu1 }
 0x2a7   : > { %v2404_v34 = vpop.f32.mrb[43].mxu1 }
 0x2a8   : > { %797 = vmax.xlane.f32.xlu0 %v796_v32  ;;  %v799_v38 = vmax.f32 %v2402_v33, %v2404_v34 }
 0x2ac   : > { %800 = vmax.xlane.f32.xlu0 %v799_v38  ;;  %v2408_v40 = vpop.f32.mrb[44].mxu1 }
 0x2ad   : > { %3107 = vst [vmem:[#allocation8_spill] sm:$0xff] %v2408_v40  ;;  %v2410_v42 = vpop.f32.mrb[45].mxu1 }
 0x2ae   : > { %3108 = vst [vmem:[#allocation9_spill] sm:$0xff] %v2410_v42  ;;  %v802_v45 = vmax.f32 %v2408_v40, %v2410_v42  ;;  %v2414_v52 = vpop.f32.mrb[46].mxu1 }
 0x2af   : > { %v2416_v55 = vpop.f32.mrb[47].mxu1 }
 0x2b0   : > { %3109 = vst [vmem:[#allocation10_spill] sm:$0xff] %v2416_v55  ;;  %803 = vmax.xlane.f32.xlu0 %v802_v45  ;;  %v805_v58 = vmax.f32 %v2414_v52, %v2416_v55 }
 0x2b4   : > { %806 = vmax.xlane.f32.xlu0 %v805_v58  ;;  %v2420_v61 = vpop.f32.mrb[48].mxu1 }
 0x2b5   : > { %3110 = vst [vmem:[#allocation11_spill] sm:$0xff] %v2420_v61  ;;  %v2422_v2 = vpop.f32.mrb[49].mxu1 }
 0x2b6   : > { %3111 = vst [vmem:[#allocation12_spill] sm:$0xff] %v2422_v2  ;;  %v808_v4 = vmax.f32 %v2420_v61, %v2422_v2  ;;  %v2426_v7 = vpop.f32.mrb[50].mxu1 }
 0x2b7   : > { %3112 = vst [vmem:[#allocation13_spill] sm:$0xff] %v2426_v7  ;;  %v2428_v10 = vpop.f32.mrb[51].mxu1 }
 0x2b8   : > { %3113 = vst [vmem:[#allocation14_spill] sm:$0xff] %v2428_v10  ;;  %809 = vmax.xlane.f32.xlu0 %v808_v4  ;;  %v811_v13 = vmax.f32 %v2426_v7, %v2428_v10 }
 0x2bc   : > { %812 = vmax.xlane.f32.xlu0 %v811_v13  ;;  %v2432_v15 = vpop.f32.mrb[52].mxu1 }
 0x2bd   : > { %3114 = vst [vmem:[#allocation15_spill] sm:$0xff] %v2432_v15  ;;  %v2434_v17 = vpop.f32.mrb[53].mxu1 }
 0x2be   : > { %3115 = vst [vmem:[#allocation16_spill] sm:$0xff] %v2434_v17  ;;  %v2436_v20 = vpop.f32.mrb[54].mxu1  ;;  %v814_v23 = vmax.f32 %v2432_v15, %v2434_v17 }
 0x2bf   : > { %3116 = vst [vmem:[#allocation17_spill] sm:$0xff] %v2436_v20  ;;  %v2440_v26 = vpop.f32.mrb[55].mxu1 }
 0x2c0   : > { %3117 = vst [vmem:[#allocation18_spill] sm:$0xff] %v2440_v26  ;;  %815 = vmax.xlane.f32.xlu0 %v814_v23  ;;  %v817_v29 = vmax.f32 %v2436_v20, %v2440_v26 }
 0x2c2   : > { %818 = vmax.xlane.f32.xlu1 %v817_v29 }
 0x2c4   : > { %v2444_v32 = vpop.f32.mrb[56].mxu1 }
 0x2c5   : > { %3118 = vst [vmem:[#allocation19_spill] sm:$0xff] %v2444_v32  ;;  %v2446_v38 = vpop.f32.mrb[57].mxu1 }
 0x2c6   : > { %3119 = vst [vmem:[#allocation20_spill] sm:$0xff] %v2446_v38  ;;  %v820_v45 = vmax.f32 %v2444_v32, %v2446_v38  ;;  %v2450_v58 = vpop.f32.mrb[58].mxu1 }
 0x2c7   : > { %v2452_v4 = vpop.f32.mrb[59].mxu1 }
 0x2c8   : > { %821 = vmax.xlane.f32.xlu1 %v820_v45 }
 0x2cc   : > { %v2456_v23 = vpop.f32.mrb[60].mxu1 }
 0x2cd   : > { %3120 = vst [vmem:[#allocation21_spill] sm:$0xff] %v2456_v23  ;;  %v2458_v50 = vpop.f32.mrb[61].mxu1 }
 0x2ce   : > { %3121 = vst [vmem:[#allocation22_spill] sm:$0xff] %v2458_v50  ;;  %v826_v29 = vmax.f32 %v2456_v23, %v2458_v50  ;;  %v2462_v49 = vpop.f32.mrb[62].mxu1 }
 0x2cf   : > { %v2464_v26 = vpop.f32.mrb[63].mxu1 }
 0x2d0   : > { %827 = vmax.xlane.f32.xlu1 %v826_v29 }
 0x2d4   : > { %v2468_v32 = vpop.f32.mrb[64].mxu1 }
 0x2d5   : > { %v2470_v45 = vpop.f32.mrb[65].mxu1 }
 0x2d6   : > { %v2472_v13 = vpop.f32.mrb[66].mxu1 }
 0x2d7   : > { %v2476_v17 = vpop.f32.mrb[67].mxu1 }
 0x2d8   : > { %3122 = vst [vmem:[#allocation23_spill] sm:$0xff] %v2476_v17 }
 0x2ed   : > { %v744_v23 = vpop.xlane.xlu0 %743 }
 0x2ee   : > { %v838_v29 = vsub.f32 %v2285_v35, %v744_v23  ;;  %v839_v15 = vsub.f32 %v2287_v36, %v744_v23 }
 0x2f0   : > { %v902_v38 = vmul.f32 1.442695, %v838_v29  ;;  %v904_v10 = vmul.f32 1.442695, %v839_v15 }
 0x2f1   : > { %v747_v7 = vpop.xlane.xlu0 %746 }
 0x2f2   : > { %1827 = vpow2.f32 %v902_v38  ;;  %v840_v2 = vsub.f32 %v2289_v37, %v747_v7  ;;  %v841_v61 = vsub.f32 %v2293_v39, %v747_v7 }
 0x2f3   : > { %1829 = vpow2.f32 %v904_v10 }
 0x2f4   : > { %v906_v20 = vmul.f32 1.442695, %v840_v2  ;;  %v908_v42 = vmul.f32 1.442695, %v841_v61 }
 0x2f5   : > { %v750_v40 = vpop.xlane.xlu0 %749 }
 0x2f6   : > { %1831 = vpow2.f32 %v906_v20  ;;  %v842_v50 = vsub.f32 %v2297_v1, %v750_v40  ;;  %v843_v55 = vsub.f32 %v2299_v41, %v750_v40 }
 0x2f7   : > { %1833 = vpow2.f32 %v908_v42 }
 0x2f8   : > { %v910_v35 = vmul.f32 1.442695, %v842_v50  ;;  %v912_v36 = vmul.f32 1.442695, %v843_v55 }
 0x2f9   : > { %v753_v23 = vpop.xlane.xlu0 %752 }
 0x2fa   : > { %1835 = vpow2.f32 %v910_v35  ;;  %v844_v15 = vsub.f32 %v2303_v43, %v753_v23  ;;  %v845_v37 = vsub.f32 %v2305_v44, %v753_v23 }
 0x2fb   : > { %1837 = vpow2.f32 %v912_v36 }
 0x2fc   : > { %v2488_v39 = vpop.eup %1827  ;;  %v914_v2 = vmul.f32 1.442695, %v844_v15  ;;  %v916_v61 = vmul.f32 1.442695, %v845_v37 }
 0x2fd   : > { %v2490_v7 = vpop.eup %1829  ;;  %v756_v10 = vpop.xlane.xlu0 %755 }
 0x2fe   : > { %1839 = vpow2.f32 %v914_v2  ;;  %v846_v1 = vsub.f32 %v2309_v47, %v756_v10  ;;  %v847_v50 = vsub.f32 %v2311_v51, %v756_v10  ;;  %v1030_v41 = vadd.f32 %v2490_v7, %v2488_v39 }
 0x2ff   : > { %1841 = vpow2.f32 %v916_v61 }
 0x300   : > { %v2496_v43 = vpop.eup %1831  ;;  %v918_v44 = vmul.f32 1.442695, %v846_v1  ;;  %v920_v40 = vmul.f32 1.442695, %v847_v50  ;;  %1031 = vadd.xlane.f32.xlu0 %v1030_v41 }
 0x301   : > { %v2498_v42 = vpop.eup %1833  ;;  %v759_v55 = vpop.xlane.xlu0 %758 }
 0x302   : > { %1843 = vpow2.f32 %v918_v44  ;;  %v848_v20 = vsub.f32 %v2315_v53, %v759_v55  ;;  %v849_v38 = vsub.f32 %v2317_v54, %v759_v55  ;;  %v1033_v47 = vadd.f32 %v2498_v42, %v2496_v43 }
 0x303   : > { %1845 = vpow2.f32 %v920_v40 }
 0x304   : > { %v2504_v51 = vpop.eup %1835  ;;  %v922_v29 = vmul.f32 1.442695, %v848_v20  ;;  %v924_v35 = vmul.f32 1.442695, %v849_v38  ;;  %1034 = vadd.xlane.f32.xlu0 %v1033_v47 }
 0x305   : > { %v2506_v36 = vpop.eup %1837  ;;  %v2508_v23 = vpop.xlane.xlu0 %761 }
 0x306   : > { %1847 = vpow2.f32 %v922_v29  ;;  %v1036_v15 = vadd.f32 %v2506_v36, %v2504_v51 }
 0x307   : > { %1849 = vpow2.f32 %v924_v35 }
 0x308   : > { %v2512_v53 = vpop.eup %1839  ;;  %1037 = vadd.xlane.f32.xlu1 %v1036_v15 }
 0x309   : > { %v2514_v54 = vpop.eup %1841  ;;  %v765_v37 = vpop.xlane.xlu0 %764 }
 0x30a   : > { %v852_v2 = vsub.f32 %v2327_v59, %v765_v37  ;;  %v853_v61 = vsub.f32 %v2329_v60, %v765_v37  ;;  %v1039_v10 = vadd.f32 %v2514_v54, %v2512_v53 }
 0x30c   : > { %v2520_v1 = vpop.eup %1843  ;;  %v930_v50 = vmul.f32 1.442695, %v852_v2  ;;  %v932_v41 = vmul.f32 1.442695, %v853_v61  ;;  %1040 = vadd.xlane.f32.xlu1 %v1039_v10 }
 0x30d   : > { %v2522_v44 = vpop.eup %1845  ;;  %v2524_v40 = vpop.xlane.xlu1 %767 }
 0x30e   : > { %1851 = vpow2.f32 %v930_v50  ;;  %v1042_v55 = vadd.f32 %v2522_v44, %v2520_v1 }
 0x30f   : > { %1853 = vpow2.f32 %v932_v41  ;;  %v771_v59 = vpop.xlane.xlu0 %770 }
 0x310   : > { %v2528_v20 = vpop.eup %1847  ;;  %v856_v60 = vsub.f32 %v2337_v0, %v771_v59  ;;  %v857_v38 = vsub.f32 %v2341_v3, %v771_v59  ;;  %1043 = vadd.xlane.f32.xlu1 %v1042_v55  ;;  %v288_v3 = vld [vmem:[%s3070_s2 + $0x28] sm:$0xff] }
 0x311   : > { %v2532_v47 = vpop.eup %1849  ;;  %v312_v29 = vpop.permute.xlu1 %311 }
 0x312   : > { %v938_v35 = vmul.f32 1.442695, %v856_v60  ;;  %v940_v15 = vmul.f32 1.442695, %v857_v38  ;;  %v2535_v37 = vadd.f32 %v2246_v46, %v312_v29  ;;  %v2538_v2 = vadd.f32 %v2248_v48, %v312_v29 }
 0x313   : > { %v1045_v61 = vadd.f32 %v2532_v47, %v2528_v20  ;;  %v3123_v46 = vmax.f32 %v2462_v49, %v2464_v26 }
 0x314   : > { %1855 = vpow2.f32 %v938_v35 }
 0x315   : > { %1046 = vadd.xlane.f32.xlu1 %v1045_v61  ;;  %v2542_v0 = vpop.xlane.xlu0 %773  ;;  %1857 = vpow2.f32 %v940_v15 }
 0x318   : > { %v2547_v10 = vpop.eup %1851 }
 0x319   : > { %v2549_v50 = vpop.eup %1853  ;;  %830 = vmax.xlane.f32.xlu1 %v3123_v46  ;;  %v777_v48 = vpop.xlane.xlu0 %776 }
 0x31a   : > { %v860_v41 = vsub.f32 %v2351_v8, %v777_v48  ;;  %v861_v55 = vsub.f32 %v2353_v9, %v777_v48  ;;  %316 = vperm.xlu0 %1822, %v288_v3   ;;  %v1051_v59 = vadd.f32 %v2549_v50, %v2547_v10  ;;  %v3124_v8 = vmax.f32 %v2472_v13, %v2476_v17 }
 0x31b   : > { %v850_v48 = vsub.f32 %v2321_v56, %v2508_v23 }
 0x31c   : > { %v946_v60 = vmul.f32 1.442695, %v860_v41  ;;  %v948_v38 = vmul.f32 1.442695, %v861_v55 }
 0x31d   : > { %1052 = vadd.xlane.f32.xlu1 %v1051_v59  ;;  %v2558_v29 = vpop.xlane.xlu0 %779  ;;  %v851_v59 = vsub.f32 %v2323_v57, %v2508_v23  ;;  %v854_v57 = vsub.f32 %v2333_v62, %v2524_v40 }
 0x31e   : > { %1859 = vpow2.f32 %v946_v60  ;;  %v2560_v35 = vpop.eup %1855 }
 0x31f   : > { %1861 = vpow2.f32 %v948_v38  ;;  %v2562_v15 = vpop.eup %1857 }
 0x320   : > { %v1057_v46 = vadd.f32 %v2562_v15, %v2560_v35 }
 0x321   : > { %836 = vmax.xlane.f32.xlu1 %v3124_v8  ;;  %v783_v9 = vpop.xlane.xlu0 %782  ;;  %v928_v8 = vmul.f32 1.442695, %v851_v59  ;;  %v858_v59 = vsub.f32 %v2345_v5, %v2542_v0 }
 0x322   : > { %v864_v61 = vsub.f32 %v2363_v14, %v783_v9  ;;  %v865_v3 = vsub.f32 %v2368_v16, %v783_v9  ;;  %v926_v14 = vmul.f32 1.442695, %v850_v48 }
 0x323   : > { %v942_v5 = vmul.f32 1.442695, %v858_v59 }
 0x324   : > { %v954_v41 = vmul.f32 1.442695, %v864_v61  ;;  %v956_v55 = vmul.f32 1.442695, %v865_v3 }
 0x325   : > { %1058 = vadd.xlane.f32.xlu1 %v1057_v46  ;;  %v2575_v60 = vpop.xlane.xlu0 %785  ;;  %v855_v46 = vsub.f32 %v2335_v63, %v2524_v40 }
 0x326   : > { %1863 = vpow2.f32 %v954_v41 }
 0x327   : > { %1865 = vpow2.f32 %v956_v55  ;;  %v936_v55 = vmul.f32 1.442695, %v855_v46 }
 0x328   : > { %v2577_v38 = vpop.eup %1859  ;;  %1867 = vpow2.f32 %v926_v14 }
 0x329   : > { %v2579_v16 = vpop.eup %1861  ;;  %v789_v9 = vpop.xlane.xlu0 %788  ;;  %1869 = vpow2.f32 %v928_v8  ;;  %v862_v8 = vsub.f32 %v2357_v11, %v2558_v29  ;;  %v866_v11 = vsub.f32 %v2372_v18, %v2575_v60 }
 0x32a   : > { %v868_v17 = vsub.f32 %v2378_v21, %v789_v9  ;;  %v869_v56 = vsub.f32 %v2380_v22, %v789_v9  ;;  %v1063_v61 = vadd.f32 %v2579_v16, %v2577_v38  ;;  %v934_v22 = vmul.f32 1.442695, %v854_v57 }
 0x32b   : > { %v950_v57 = vmul.f32 1.442695, %v862_v8 }
 0x32c   : > { %v962_v23 = vmul.f32 1.442695, %v868_v17  ;;  %v964_v3 = vmul.f32 1.442695, %v869_v56  ;;  %1064 = vadd.xlane.f32.xlu1 %v1063_v61  ;;  %v859_v17 = vsub.f32 %v2347_v6, %v2542_v0  ;;  %v863_v61 = vsub.f32 %v2359_v12, %v2558_v29 }
 0x32d   : > { %v792_v48 = vpop.xlane.xlu0 %791  ;;  %v867_v12 = vsub.f32 %v2374_v19, %v2575_v60  ;;  %v3125_v29 = vmax.f32 %v2450_v58, %v2452_v4 }
 0x32e   : > { %1871 = vpow2.f32 %v962_v23  ;;  %v952_v46 = vmul.f32 1.442695, %v863_v61  ;;  %v870_v19 = vsub.f32 %v2384_v24, %v792_v48 }
 0x32f   : > { %1873 = vpow2.f32 %v964_v3 }
 0x330   : > { %v2589_v21 = vpop.eup %1863  ;;  %1875 = vpow2.f32 %v934_v22 }
 0x331   : > { %v2591_v41 = vpop.eup %1865  ;;  %v795_v62 = vpop.xlane.xlu0 %794  ;;  %1877 = vpow2.f32 %v936_v55 }
 0x332   : > { %v872_v14 = vsub.f32 %v2390_v27, %v795_v62  ;;  %v873_v63 = vsub.f32 %v2392_v28, %v795_v62  ;;  %v1069_v40 = vadd.f32 %v2591_v41, %v2589_v21  ;;  %v2605_v0 = vpop.eup %1867  ;;  %v944_v27 = vmul.f32 1.442695, %v859_v17 }
 0x333   : > { %v2607_v28 = vpop.eup %1869  ;;  %v958_v17 = vmul.f32 1.442695, %v866_v11  ;;  %v3127_v11 = vld [vmem:[#allocation10_spill] sm:$0xff] }
 0x334   : > { %v970_v9 = vmul.f32 1.442695, %v872_v14  ;;  %v972_v56 = vmul.f32 1.442695, %v873_v63  ;;  %1070 = vadd.xlane.f32.xlu1 %v1069_v40  ;;  %v1048_v62 = vadd.f32 %v2607_v28, %v2605_v0  ;;  %v960_v63 = vmul.f32 1.442695, %v867_v12 }
 0x335   : > { %v798_v6 = vpop.xlane.xlu0 %797  ;;  %v871_v40 = vsub.f32 %v2386_v25, %v792_v48  ;;  %v3126_v25 = vmax.f32 %v2468_v32, %v2470_v45 }
 0x336   : > { %1879 = vpow2.f32 %v970_v9  ;;  %v874_v61 = vsub.f32 %v2396_v30, %v798_v6 }
 0x337   : > { %1881 = vpow2.f32 %v972_v56  ;;  %v966_v56 = vmul.f32 1.442695, %v870_v19 }
 0x338   : > { %v2609_v23 = vpop.eup %1871  ;;  %1883 = vpow2.f32 %v942_v5  ;;  %v968_v5 = vmul.f32 1.442695, %v871_v40 }
 0x339   : > { %v2613_v3 = vpop.eup %1873  ;;  %824 = vmax.xlane.f32.xlu0 %v3125_v29  ;;  %v801_v22 = vpop.xlane.xlu0 %800  ;;  %1885 = vpow2.f32 %v944_v27  ;;  %v875_v27 = vsub.f32 %v2398_v31, %v798_v6  ;;  %v3130_v6 = vld [vmem:[#allocation9_spill] sm:$0xff] }
 0x33a   : > { %v876_v55 = vsub.f32 %v2402_v33, %v801_v22  ;;  %v877_v59 = vsub.f32 %v2404_v34, %v801_v22  ;;  %v1075_v18 = vadd.f32 %v2613_v3, %v2609_v23  ;;  %1887 = vpow2.f32 %v950_v57  ;;  %v2628_v34 = vpop.eup %1875 }
 0x33b   : > { %1889 = vpow2.f32 %v952_v46  ;;  %v2630_v8 = vpop.eup %1877 }
 0x33c   : > { %v978_v60 = vmul.f32 1.442695, %v876_v55  ;;  %v980_v14 = vmul.f32 1.442695, %v877_v59  ;;  %1076 = vadd.xlane.f32.xlu1 %v1075_v18  ;;  %v1054_v22 = vadd.f32 %v2630_v8, %v2628_v34  ;;  %v3128_v55 = vld [vmem:[#allocation8_spill] sm:$0xff] }
 0x33d   : > { %1049 = vadd.xlane.f32.xlu0 %v1048_v62  ;;  %v804_v33 = vpop.xlane.xlu0 %803 }
 0x33e   : > { %1891 = vpow2.f32 %v978_v60  ;;  %v878_v59 = vsub.f32 %v3128_v55, %v804_v33  ;;  %v976_v60 = vmul.f32 1.442695, %v875_v27 }
 0x33f   : > { %1893 = vpow2.f32 %v980_v14 }
 0x340   : > { %v2632_v9 = vpop.eup %1879  ;;  %1895 = vpow2.f32 %v958_v17  ;;  %v879_v17 = vsub.f32 %v3130_v6, %v804_v33  ;;  %v3132_v33 = vld [vmem:[#allocation12_spill] sm:$0xff] }
 0x341   : > { %v2634_v24 = vpop.eup %1881  ;;  %1897 = vpow2.f32 %v960_v63  ;;  %833 = vmax.xlane.f32.xlu0 %v3126_v25  ;;  %v807_v48 = vpop.xlane.xlu0 %806  ;;  %v3131_v25 = vld [vmem:[#allocation11_spill] sm:$0xff] }
 0x342   : > { %v880_v57 = vsub.f32 %v2414_v52, %v807_v48  ;;  %v881_v46 = vsub.f32 %v3127_v11, %v807_v48  ;;  %v1081_v12 = vadd.f32 %v2634_v24, %v2632_v9  ;;  %v2645_v29 = vpop.eup %1883  ;;  %1899 = vpow2.f32 %v966_v56 }
 0x343   : > { %v2649_v30 = vpop.eup %1885  ;;  %1901 = vpow2.f32 %v968_v5  ;;  %v974_v52 = vmul.f32 1.442695, %v874_v61  ;;  %v982_v56 = vmul.f32 1.442695, %v878_v59  ;;  %v984_v5 = vmul.f32 1.442695, %v879_v17 }
 0x344   : > { %v986_v18 = vmul.f32 1.442695, %v880_v57  ;;  %v988_v62 = vmul.f32 1.442695, %v881_v46  ;;  %1082 = vadd.xlane.f32.xlu1 %v1081_v12  ;;  %v2652_v31 = vpop.eup %1887  ;;  %v1060_v63 = vadd.f32 %v2649_v30, %v2645_v29  ;;  %v3133_v46 = vld [vmem:[#allocation13_spill] sm:$0xff] }
 0x345   : > { %3129 = vst [vmem:[#allocation10_spill] sm:$0xff] %v2652_v31  ;;  %1055 = vadd.xlane.f32.xlu0 %v1054_v22  ;;  %v810_v19 = vpop.xlane.xlu0 %809  ;;  %v2655_v14 = vpop.eup %1889  ;;  %v3134_v22 = vld [vmem:[#allocation14_spill] sm:$0xff] }
 0x346   : > { %1903 = vpow2.f32 %v986_v18  ;;  %v882_v48 = vsub.f32 %v3131_v25, %v810_v19  ;;  %v883_v61 = vsub.f32 %v3132_v33, %v810_v19  ;;  %v3136_v25 = vld [vmem:[#allocation15_spill] sm:$0xff] }
 0x347   : > { %1905 = vpow2.f32 %v988_v62  ;;  %v1066_v62 = vadd.f32 %v2655_v14, %v2652_v31 }
 0x348   : > { %v2659_v40 = vpop.eup %1891  ;;  %1907 = vpow2.f32 %v974_v52  ;;  %v990_v52 = vmul.f32 1.442695, %v882_v48  ;;  %v992_v19 = vmul.f32 1.442695, %v883_v61  ;;  %v3138_v61 = vld [vmem:[#allocation17_spill] sm:$0xff] }
 0x349   : > { %v2662_v57 = vpop.eup %1893  ;;  %1061 = vadd.xlane.f32.xlu0 %v1060_v63  ;;  %v813_v27 = vpop.xlane.xlu0 %812  ;;  %1909 = vpow2.f32 %v976_v60 }
 0x34a   : > { %v2665_v11 = vpop.eup %1895  ;;  %v884_v12 = vsub.f32 %v3133_v46, %v813_v27  ;;  %v885_v55 = vsub.f32 %v3134_v22, %v813_v27  ;;  %v1087_v59 = vadd.f32 %v2662_v57, %v2659_v40  ;;  %1911 = vpow2.f32 %v982_v56  ;;  %v3137_v27 = vld [vmem:[#allocation16_spill] sm:$0xff] }
 0x34b   : > { %v2671_v18 = vpop.eup %1897  ;;  %1913 = vpow2.f32 %v984_v5 }
 0x34c   : > { %v994_v6 = vmul.f32 1.442695, %v884_v12  ;;  %v996_v17 = vmul.f32 1.442695, %v885_v55  ;;  %1088 = vadd.xlane.f32.xlu1 %v1087_v59  ;;  %v2675_v63 = vpop.eup %1899  ;;  %v1072_v56 = vadd.f32 %v2671_v18, %v2665_v11  ;;  %v3139_v55 = vld [vmem:[#allocation18_spill] sm:$0xff] }
 0x34d   : > { %1067 = vadd.xlane.f32.xlu0 %v1066_v62  ;;  %v816_v60 = vpop.xlane.xlu0 %815  ;;  %3135 = vst [vmem:[#allocation8_spill] sm:$0xff] %v2675_v63  ;;  %v2679_v22 = vpop.eup %1901 }
 0x34e   : > { %1915 = vpow2.f32 %v994_v6  ;;  %v886_v33 = vsub.f32 %v3136_v25, %v816_v60  ;;  %v887_v46 = vsub.f32 %v3137_v27, %v816_v60 }
 0x34f   : > { %1917 = vpow2.f32 %v996_v17  ;;  %v819_v31 = vpop.xlane.xlu1 %818 }
 0x350   : > { %v2683_v48 = vpop.eup %1903  ;;  %1919 = vpow2.f32 %v990_v52  ;;  %v998_v5 = vmul.f32 1.442695, %v886_v33  ;;  %v888_v12 = vsub.f32 %v3138_v61, %v819_v31  ;;  %v889_v59 = vsub.f32 %v3139_v55, %v819_v31  ;;  %v3144_v61 = vld [vmem:[#allocation20_spill] sm:$0xff] }
 0x351   : > { %v2687_v62 = vpop.eup %1905  ;;  %1921 = vpow2.f32 %v992_v19  ;;  %1073 = vadd.xlane.f32.xlu0 %v1072_v56  ;;  %v1000_v6 = vmul.f32 1.442695, %v887_v46  ;;  %v1078_v52 = vadd.f32 %v2679_v22, %v2675_v63  ;;  %v3143_v46 = vld [vmem:[#allocation19_spill] sm:$0xff] }
 0x352   : > { %v1002_v60 = vmul.f32 1.442695, %v888_v12  ;;  %v1004_v25 = vmul.f32 1.442695, %v889_v59  ;;  %v1093_v17 = vadd.f32 %v2687_v62, %v2683_v48  ;;  %v2691_v27 = vpop.eup %1907  ;;  %1923 = vpow2.f32 %v998_v5 }
 0x353   : > { %3140 = vst [vmem:[#allocation9_spill] sm:$0xff] %v2691_v27  ;;  %v2695_v33 = vpop.eup %1909 }
 0x354   : > { %3141 = vst [vmem:[#allocation11_spill] sm:$0xff] %v2695_v33  ;;  %1925 = vpow2.f32 %v1002_v60  ;;  %1094 = vadd.xlane.f32.xlu1 %v1093_v17  ;;  %v2697_v19 = vpop.eup %1911  ;;  %v1084_v5 = vadd.f32 %v2695_v33, %v2691_v27  ;;  %v3150_v27 = vld [vmem:[#allocation22_spill] sm:$0xff] }
 0x355   : > { %1927 = vpow2.f32 %v1004_v25  ;;  %1079 = vadd.xlane.f32.xlu0 %v1078_v52  ;;  %v822_v31 = vpop.xlane.xlu1 %821  ;;  %3142 = vst [vmem:[#allocation12_spill] sm:$0xff] %v2697_v19  ;;  %v2701_v55 = vpop.eup %1913 }
 0x356   : > { %1929 = vpow2.f32 %v1000_v6  ;;  %v890_v56 = vsub.f32 %v3143_v46, %v822_v31  ;;  %v891_v12 = vsub.f32 %v3144_v61, %v822_v31  ;;  %v1090_v31 = vadd.f32 %v2701_v55, %v2697_v19 }
 0x358   : > { %v2705_v59 = vpop.eup %1915  ;;  %v1006_v63 = vmul.f32 1.442695, %v890_v56  ;;  %v1008_v60 = vmul.f32 1.442695, %v891_v12  ;;  %v3149_v12 = vld [vmem:[#allocation21_spill] sm:$0xff] }
 0x359   : > { %3145 = vst [vmem:[#allocation13_spill] sm:$0xff] %v2705_v59  ;;  %v2707_v17 = vpop.eup %1917  ;;  %1085 = vadd.xlane.f32.xlu0 %v1084_v5 }
 0x35a   : > { %3146 = vst [vmem:[#allocation14_spill] sm:$0xff] %v2707_v17  ;;  %v2709_v25 = vpop.eup %1919  ;;  %1931 = vpow2.f32 %v1006_v63  ;;  %v1099_v6 = vadd.f32 %v2707_v17, %v2705_v59 }
 0x35b   : > { %v2713_v52 = vpop.eup %1921  ;;  %1933 = vpow2.f32 %v1008_v60 }
 0x35c   : > { %1100 = vadd.xlane.f32.xlu1 %v1099_v6  ;;  %v2717_v46 = vpop.eup %1923  ;;  %v1096_v59 = vadd.f32 %v2713_v52, %v2709_v25 }
 0x35d   : > { %3147 = vst [vmem:[#allocation15_spill] sm:$0xff] %v2717_v46  ;;  %1091 = vadd.xlane.f32.xlu0 %v1090_v31  ;;  %v828_v56 = vpop.xlane.xlu1 %827 }
 0x35e   : > { %v2719_v61 = vpop.eup %1925  ;;  %v894_v5 = vsub.f32 %v3149_v12, %v828_v56  ;;  %v895_v63 = vsub.f32 %v3150_v27, %v828_v56 }
 0x35f   : > { %3148 = vst [vmem:[#allocation16_spill] sm:$0xff] %v2719_v61  ;;  %v2723_v33 = vpop.eup %1927 }
 0x360   : > { %v2727_v60 = vpop.eup %1929  ;;  %v1014_v17 = vmul.f32 1.442695, %v894_v5  ;;  %v1016_v19 = vmul.f32 1.442695, %v895_v63  ;;  %v1105_v6 = vadd.f32 %v2723_v33, %v2719_v61 }
 0x361   : > { %3151 = vst [vmem:[#allocation17_spill] sm:$0xff] %v2727_v60  ;;  %1097 = vadd.xlane.f32.xlu0 %v1096_v59  ;;  %v1102_v27 = vadd.f32 %v2727_v60, %v2717_v46  ;;  %v3155_v60 = vld [vmem:[#allocation6_spill] sm:$0xff] }
 0x362   : > { %1935 = vpow2.f32 %v1014_v17  ;;  %1106 = vadd.xlane.f32.xlu1 %v1105_v6 }
 0x363   : > { %1937 = vpow2.f32 %v1016_v19 }
 0x364   : > { %v2733_v31 = vpop.eup %1931 }
 0x365   : > { %3152 = vst [vmem:[#allocation18_spill] sm:$0xff] %v2733_v31  ;;  %v2735_v56 = vpop.eup %1933  ;;  %1103 = vadd.xlane.f32.xlu0 %v1102_v27 }
 0x366   : > { %3153 = vst [vmem:[#allocation19_spill] sm:$0xff] %v2735_v56  ;;  %v1108_v12 = vadd.f32 %v2735_v56, %v2733_v31 }
 0x369   : > { %1109 = vadd.xlane.f32.xlu0 %v1108_v12 }
 0x36c   : > { %v2739_v5 = vpop.eup %1935 }
 0x36d   : > { %3154 = vst [vmem:[#allocation20_spill] sm:$0xff] %v2739_v5  ;;  %v2741_v59 = vpop.eup %1937 }
 0x36e   : > { %v1114_v19 = vadd.f32 %v2741_v59, %v2739_v5  ;;  %v3156_v5 = vld [vmem:[#allocation7_spill] sm:$0xff] }
 0x370   : > { %1115 = vadd.xlane.f32.xlu0 %v1114_v19 }
 0x38d   : > { %v1032_v17 = vpop.xlane.xlu0 %1031 }
 0x38e   : > { %1939 = vrcp.f32 %v1032_v17 }
 0x391   : > { %v1035_v63 = vpop.xlane.xlu0 %1034 }
 0x392   : > { %1941 = vrcp.f32 %v1035_v63 }
 0x395   : > { %v1038_v6 = vpop.xlane.xlu1 %1037 }
 0x396   : > { %1943 = vrcp.f32 %v1038_v6 }
 0x398   : > { %v1940_v27 = vpop.eup %1939 }
 0x399   : > { %v1158_v12 = vmul.f32 %v1940_v27, %v2488_v39  ;;  %v317_v31 = vpop.permute.xlu0 %316  ;;  %v1041_v56 = vpop.xlane.xlu1 %1040  ;;  %v1159_v46 = vmul.f32 %v1940_v27, %v2490_v7 }
 0x39a   : > { %v403_v61 = vadd.f32 %v3155_v60, %v317_v31  ;;  %v405_v19 = vadd.f32 %v3156_v5, %v317_v31  ;;  %1945 = vrcp.f32 %v1041_v56 }
 0x39b   : > { %1222 = vst [vmem:[%s2752_s3] sm:$0xff] %v1158_v12  ;;  %1223 = vst [vmem:[%s2752_s3 + $0x8] sm:$0xff] %v1159_v46 }
 0x39c   : > { %v1942_v17 = vpop.eup %1941  ;;  %v411_v39 = vpack.c.bf16 %v403_v61, %v2535_v37  ;;  %v412_v63 = vpack.c.bf16 %v405_v19, %v2538_v2 }
 0x39d   : > { %v1160_v7 = vmul.f32 %v1942_v17, %v2496_v43  ;;  %v1044_v60 = vpop.xlane.xlu1 %1043  ;;  %v1161_v31 = vmul.f32 %v1942_v17, %v2498_v42 }
 0x39e   : > { %1947 = vrcp.f32 %v1044_v60  ;;  %1320 = vmatprep.subr.bf16.mxu0 %v412_v63 }
 0x39f   : > { %1224 = vst [vmem:[%s2752_s3 + $0x10] sm:$0xff] %v1160_v7  ;;  %1321 = vmatpush1.bf16.xpose.msra.mxu0 %v411_v39  ;;  %1225 = vst [vmem:[%s2752_s3 + $0x18] sm:$0xff] %v1161_v31  ;;  %v1287_v56 = vpack.c.bf16 %v1161_v31, %v1159_v46  ;;  %v1286_v42 = vpack.c.bf16 %v1160_v7, %v1158_v12 }
 0x3a0   : > { %v1944_v5 = vpop.eup %1943 }
 0x3a1   : > { %1350 = vmatprep.mubr.bf16.mxu0 %v1287_v56  ;;  %v1163_v37 = vmul.f32 %v1944_v5, %v2506_v36  ;;  %v1162_v2 = vmul.f32 %v1944_v5, %v2504_v51 }
 0x3a2   : > { %v1047_v61 = vpop.xlane.xlu1 %1046 }
 0x3a3   : > { %1949 = vrcp.f32 %v1047_v61  ;;  %1227 = vst [vmem:[%s2752_s3 + $0x28] sm:$0xff] %v1163_v37  ;;  %1226 = vst [vmem:[%s2752_s3 + $0x20] sm:$0xff] %v1162_v2 }
 0x3a4   : > { %v1946_v43 = vpop.eup %1945 }
 0x3a5   : > { %v1165_v6 = vmul.f32 %v1946_v43, %v2514_v54  ;;  %v1164_v27 = vmul.f32 %v1946_v43, %v2512_v53 }
 0x3a6   : > { %v831_v46 = vpop.xlane.xlu1 %830  ;;  %1351 = vmatmul.mubr.bf16.vlgmr.msra.gmra.mrb[8].mxu0 %v1286_v42 }
 0x3a7   : > { %1229 = vst [vmem:[%s2752_s3 + $0x38] sm:$0xff] %v1165_v6  ;;  %v1289_v19 = vpack.c.bf16 %v1165_v6, %v1163_v37  ;;  %1228 = vst [vmem:[%s2752_s3 + $0x30] sm:$0xff] %v1164_v27  ;;  %v1288_v12 = vpack.c.bf16 %v1164_v27, %v1162_v2  ;;  %v897_v6 = vsub.f32 %v2464_v26, %v831_v46 }
 0x3a8   : > { %v1948_v36 = vpop.eup %1947 }
 0x3a9   : > { %1358 = vmatprep.mubr.bf16.mxu0 %v1289_v19  ;;  %v1167_v51 = vmul.f32 %v1948_v36, %v2522_v44  ;;  %v1166_v17 = vmul.f32 %v1948_v36, %v2520_v1  ;;  %v3157_v36 = vld [vmem:[#allocation23_spill] sm:$0xff] }
 0x3aa   : > { %v1053_v39 = vpop.xlane.xlu1 %1052 }
 0x3ab   : > { %1231 = vst [vmem:[%s2752_s3 + $0x48] sm:$0xff] %v1167_v51  ;;  %1230 = vst [vmem:[%s2752_s3 + $0x40] sm:$0xff] %v1166_v17  ;;  %1951 = vrcp.f32 %v1053_v39  ;;  %v1020_v39 = vmul.f32 1.442695, %v897_v6 }
 0x3ad   : > { %v1950_v54 = vpop.eup %1949 }
 0x3ae   : > { %v837_v53 = vpop.xlane.xlu1 %836  ;;  %1359 = vmatmul.mubr.bf16.gmra.mrb[12].mxu0 %v1288_v12  ;;  %v1169_v63 = vmul.f32 %v1950_v54, %v2532_v47  ;;  %v1168_v7 = vmul.f32 %v1950_v54, %v2528_v20 }
 0x3af   : > { %v900_v19 = vsub.f32 %v2472_v13, %v837_v53 }
 0x3b0   : > { %1233 = vst [vmem:[%s2752_s3 + $0x58] sm:$0xff] %v1169_v63  ;;  %v1291_v60 = vpack.c.bf16 %v1169_v63, %v1167_v51  ;;  %1232 = vst [vmem:[%s2752_s3 + $0x50] sm:$0xff] %v1168_v7  ;;  %v1290_v1 = vpack.c.bf16 %v1168_v7, %v1166_v17 }
 0x3b2   : > { %1366 = vmatprep.mubr.bf16.mxu0 %v1291_v60  ;;  %v1059_v44 = vpop.xlane.xlu1 %1058 }
 0x3b3   : > { %1953 = vrcp.f32 %v1059_v44 }
 0x3b5   : > { %v1952_v31 = vpop.eup %1951 }
 0x3b6   : > { %1367 = vmatmul.mubr.bf16.gmra.mrb[16].mxu0 %v1290_v1  ;;  %v2779_v56 = vmul.f32 %v1952_v31, %v2549_v50  ;;  %v2782_v5 = vmul.f32 %v1952_v31, %v2547_v10  ;;  %v896_v50 = vsub.f32 %v2462_v49, %v831_v46 }
 0x3b8   : > { %1237 = vst [vmem:[%s2752_s3 + $0x78] sm:$0xff] %v2779_v56  ;;  %1236 = vst [vmem:[%s2752_s3 + $0x70] sm:$0xff] %v2782_v5  ;;  %v1018_v43 = vmul.f32 1.442695, %v896_v50 }
 0x3b9   : > { %v1065_v47 = vpop.xlane.xlu1 %1064 }
 0x3ba   : > { %1955 = vrcp.f32 %v1065_v47 }
 0x3bd   : > { %v1954_v20 = vpop.eup %1953 }
 0x3be   : > { %v2789_v37 = vmul.f32 %v1954_v20, %v2562_v15  ;;  %v2792_v2 = vmul.f32 %v1954_v20, %v2560_v35 }
 0x3c0   : > { %1241 = vst [vmem:[%s2752_s3 + $0x98] sm:$0xff] %v2789_v37  ;;  %1240 = vst [vmem:[%s2752_s3 + $0x90] sm:$0xff] %v2792_v2 }
 0x3c1   : > { %v1071_v61 = vpop.xlane.xlu1 %1070 }
 0x3c2   : > { %1957 = vrcp.f32 %v1071_v61 }
 0x3c3   : > { %1959 = vpow2.f32 %v1018_v43 }
 0x3c4   : > { %v1956_v10 = vpop.eup %1955 }
 0x3c5   : > { %v2800_v42 = vmul.f32 %v1956_v10, %v2579_v16  ;;  %v2803_v15 = vmul.f32 %v1956_v10, %v2577_v38  ;;  %v901_v16 = vsub.f32 %v3157_v36, %v837_v53 }
 0x3c6   : > { %v825_v35 = vpop.xlane.xlu0 %824 }
 0x3c7   : > { %v892_v27 = vsub.f32 %v2450_v58, %v825_v35  ;;  %v893_v49 = vsub.f32 %v2452_v4, %v825_v35  ;;  %1245 = vst [vmem:[%s2752_s3 + $0xb8] sm:$0xff] %v2800_v42  ;;  %1244 = vst [vmem:[%s2752_s3 + $0xb0] sm:$0xff] %v2803_v15  ;;  %v1026_v4 = vmul.f32 1.442695, %v900_v19  ;;  %v1028_v46 = vmul.f32 1.442695, %v901_v16 }
 0x3c9   : > { %v1010_v51 = vmul.f32 1.442695, %v892_v27  ;;  %v1012_v17 = vmul.f32 1.442695, %v893_v49  ;;  %v1077_v38 = vpop.xlane.xlu1 %1076 }
 0x3ca   : > { %1961 = vrcp.f32 %v1077_v38  ;;  %v1050_v26 = vpop.xlane.xlu0 %1049 }
 0x3cb   : > { %1963 = vpow2.f32 %v1010_v51 }
 0x3cc   : > { %v1958_v58 = vpop.eup %1957  ;;  %1965 = vpow2.f32 %v1012_v17 }
 0x3cd   : > { %1967 = vrcp.f32 %v1050_v26  ;;  %v2815_v12 = vmul.f32 %v1958_v58, %v2591_v41  ;;  %v2818_v13 = vmul.f32 %v1958_v58, %v2589_v21  ;;  %v2826_v41 = vpop.eup %1959 }
 0x3ce   : > { %1969 = vpow2.f32 %v1020_v39  ;;  %v834_v54 = vpop.xlane.xlu0 %833 }
 0x3cf   : > { %v898_v53 = vsub.f32 %v2468_v32, %v834_v54  ;;  %v899_v63 = vsub.f32 %v2470_v45, %v834_v54  ;;  %1249 = vst [vmem:[%s2752_s3 + $0xd8] sm:$0xff] %v2815_v12  ;;  %1248 = vst [vmem:[%s2752_s3 + $0xd0] sm:$0xff] %v2818_v13  ;;  %1971 = vpow2.f32 %v1026_v4 }
 0x3d0   : > { %1973 = vpow2.f32 %v1028_v46 }
 0x3d1   : > { %v1022_v7 = vmul.f32 1.442695, %v898_v53  ;;  %v1024_v60 = vmul.f32 1.442695, %v899_v63  ;;  %v1083_v44 = vpop.xlane.xlu1 %1082 }
 0x3d2   : > { %1975 = vrcp.f32 %v1083_v44  ;;  %v1056_v21 = vpop.xlane.xlu0 %1055 }
 0x3d3   : > { %1977 = vpow2.f32 %v1022_v7 }
 0x3d4   : > { %v1962_v1 = vpop.eup %1961  ;;  %1979 = vpow2.f32 %v1024_v60  ;;  %v3158_v60 = vld [vmem:[#allocation10_spill] sm:$0xff] }
 0x3d5   : > { %v2828_v32 = vpop.eup %1963  ;;  %1981 = vrcp.f32 %v1056_v21  ;;  %v2831_v45 = vmul.f32 %v1962_v1, %v2613_v3  ;;  %v2834_v31 = vmul.f32 %v1962_v1, %v2609_v23 }
 0x3d6   : > { %v2836_v47 = vpop.eup %1965  ;;  %v1062_v20 = vpop.xlane.xlu0 %1061 }
 0x3d7   : > { %v1968_v50 = vpop.eup %1967  ;;  %1983 = vrcp.f32 %v1062_v20  ;;  %v1111_v61 = vadd.f32 %v2836_v47, %v2828_v32  ;;  %1253 = vst [vmem:[%s2752_s3 + $0xf8] sm:$0xff] %v2831_v45  ;;  %1252 = vst [vmem:[%s2752_s3 + $0xf0] sm:$0xff] %v2834_v31 }
 0x3d8   : > { %v2844_v10 = vpop.eup %1969  ;;  %v1171_v3 = vmul.f32 %v1968_v50, %v2607_v28  ;;  %v1170_v23 = vmul.f32 %v1968_v50, %v2605_v0 }
 0x3d9   : > { %1112 = vadd.xlane.f32.xlu1 %v1111_v61  ;;  %v1089_v43 = vpop.xlane.xlu1 %1088  ;;  %v2848_v6 = vpop.eup %1971  ;;  %v1117_v0 = vadd.f32 %v2844_v10, %v2826_v41 }
 0x3da   : > { %1985 = vrcp.f32 %v1089_v43  ;;  %1235 = vst [vmem:[%s2752_s3 + $0x68] sm:$0xff] %v1171_v3  ;;  %v1293_v35 = vpack.c.bf16 %v2779_v56, %v1171_v3  ;;  %v1068_v27 = vpop.xlane.xlu0 %1067  ;;  %1234 = vst [vmem:[%s2752_s3 + $0x60] sm:$0xff] %v1170_v23  ;;  %v1292_v49 = vpack.c.bf16 %v2782_v5, %v1170_v23  ;;  %v2854_v19 = vpop.eup %1973  ;;  %v3159_v23 = vld [vmem:[#allocation8_spill] sm:$0xff] }
 0x3db   : > { %1987 = vrcp.f32 %v1068_v27  ;;  %v1123_v39 = vadd.f32 %v2854_v19, %v2848_v6 }
 0x3dc   : > { %v1976_v28 = vpop.eup %1975  ;;  %1374 = vmatprep.mubr.bf16.mxu0 %v1293_v35  ;;  %v3160_v35 = vld [vmem:[#allocation11_spill] sm:$0xff] }
 0x3dd   : > { %v2858_v36 = vpop.eup %1977  ;;  %1375 = vmatmul.mubr.bf16.gmra.mrb[20].mxu0 %v1292_v49  ;;  %1118 = vadd.xlane.f32.xlu1 %v1117_v0  ;;  %v2861_v56 = vmul.f32 %v1976_v28, %v2634_v24  ;;  %v2864_v16 = vmul.f32 %v1976_v28, %v2632_v9  ;;  %v3161_v49 = vld [vmem:[#allocation9_spill] sm:$0xff] }
 0x3de   : > { %v2866_v5 = vpop.eup %1979  ;;  %v1074_v51 = vpop.xlane.xlu0 %1073 }
 0x3df   : > { %v1982_v17 = vpop.eup %1981  ;;  %1989 = vrcp.f32 %v1074_v51  ;;  %v1120_v38 = vadd.f32 %v2866_v5, %v2858_v36  ;;  %1257 = vst [vmem:[%s2752_s3 + $0x118] sm:$0xff] %v2861_v56  ;;  %1256 = vst [vmem:[%s2752_s3 + $0x110] sm:$0xff] %v2864_v16 }
 0x3e0   : > { %v1175_v9 = vmul.f32 %v1982_v17, %v2630_v8  ;;  %v1174_v24 = vmul.f32 %v1982_v17, %v2628_v34  ;;  %v1750_v17 = vld [vmem:[#allocation2] ss:$0 sm:$0xff] }
 0x3e1   : > { %v1984_v26 = vpop.eup %1983  ;;  %1121 = vadd.xlane.f32.xlu0 %v1120_v38  ;;  %1124 = vadd.xlane.f32.xlu1 %v1123_v39  ;;  %v1095_v58 = vpop.xlane.xlu1 %1094  ;;  %v3162_v39 = vld [vmem:[#allocation14_spill] sm:$0xff] }
 0x3e2   : > { %1991 = vrcp.f32 %v1095_v58  ;;  %v1080_v4 = vpop.xlane.xlu0 %1079  ;;  %1239 = vst [vmem:[%s2752_s3 + $0x88] sm:$0xff] %v1175_v9  ;;  %v1295_v46 = vpack.c.bf16 %v2789_v37, %v1175_v9  ;;  %1238 = vst [vmem:[%s2752_s3 + $0x80] sm:$0xff] %v1174_v24  ;;  %v1294_v54 = vpack.c.bf16 %v2792_v2, %v1174_v24  ;;  %v1179_v53 = vmul.f32 %v1984_v26, %v2649_v30  ;;  %v3163_v24 = vld [vmem:[#allocation13_spill] sm:$0xff] }
 0x3e3   : > { %1993 = vrcp.f32 %v1080_v4  ;;  %v1178_v34 = vmul.f32 %v1984_v26, %v2645_v29  ;;  %v3164_v4 = vld [vmem:[#allocation12_spill] sm:$0xff] }
 0x3e4   : > { %v1986_v8 = vpop.eup %1985  ;;  %1382 = vmatprep.mubr.bf16.mxu0 %v1295_v46  ;;  %1243 = vst [vmem:[%s2752_s3 + $0xa8] sm:$0xff] %v1179_v53  ;;  %v1297_v63 = vpack.c.bf16 %v2800_v42, %v1179_v53 }
 0x3e5   : > { %v1988_v7 = vpop.eup %1987  ;;  %1383 = vmatmul.mubr.bf16.gmra.mrb[24].mxu0 %v1294_v54  ;;  %1242 = vst [vmem:[%s2752_s3 + $0xa0] sm:$0xff] %v1178_v34  ;;  %v2888_v37 = vmul.f32 %v1986_v8, %v2662_v57  ;;  %v2891_v30 = vmul.f32 %v1986_v8, %v2659_v40 }
 0x3e6   : > { %v1086_v2 = vpop.xlane.xlu0 %1085  ;;  %1390 = vmatprep.mubr.bf16.mxu0 %v1297_v63  ;;  %v1183_v29 = vmul.f32 %v1988_v7, %v2655_v14  ;;  %v1182_v44 = vmul.f32 %v1988_v7, %v3158_v60  ;;  %v1296_v14 = vpack.c.bf16 %v2803_v15, %v1178_v34  ;;  %v3165_v63 = vld [vmem:[#allocation16_spill] sm:$0xff] }
 0x3e7   : > { %1995 = vrcp.f32 %v1086_v2  ;;  %1261 = vst [vmem:[%s2752_s3 + $0x138] sm:$0xff] %v2888_v37  ;;  %1260 = vst [vmem:[%s2752_s3 + $0x130] sm:$0xff] %v2891_v30 }
 0x3e8   : > { %1247 = vst [vmem:[%s2752_s3 + $0xc8] sm:$0xff] %v1183_v29  ;;  %1246 = vst [vmem:[%s2752_s3 + $0xc0] sm:$0xff] %v1182_v44  ;;  %v1299_v50 = vpack.c.bf16 %v2815_v12, %v1183_v29 }
 0x3e9   : > { %v1990_v57 = vpop.eup %1989  ;;  %v1101_v42 = vpop.xlane.xlu1 %1100 }
 0x3ea   : > { %1997 = vrcp.f32 %v1101_v42  ;;  %v1092_v40 = vpop.xlane.xlu0 %1091  ;;  %v1187_v21 = vmul.f32 %v1990_v57, %v2671_v18  ;;  %v1186_v1 = vmul.f32 %v1990_v57, %v2665_v11  ;;  %v3169_v42 = vld [vmem:[#allocation18_spill] sm:$0xff] }
 0x3eb   : > { %1999 = vrcp.f32 %v1092_v40 }
 0x3ec   : > { %v1992_v20 = vpop.eup %1991  ;;  %1251 = vst [vmem:[%s2752_s3 + $0xe8] sm:$0xff] %v1187_v21  ;;  %1250 = vst [vmem:[%s2752_s3 + $0xe0] sm:$0xff] %v1186_v1  ;;  %v1301_v51 = vpack.c.bf16 %v2831_v45, %v1187_v21 }
 0x3ed   : > { %v1994_v61 = vpop.eup %1993  ;;  %1391 = vmatmul.mubr.bf16.gmra.mrb[28].mxu0 %v1296_v14  ;;  %v2908_v3 = vmul.f32 %v1992_v20, %v2687_v62  ;;  %v2911_v18 = vmul.f32 %v1992_v20, %v2683_v48 }
 0x3ee   : > { %1398 = vmatprep.mubr.bf16.mxu0 %v1299_v50  ;;  %v1098_v11 = vpop.xlane.xlu0 %1097  ;;  %v1191_v15 = vmul.f32 %v1994_v61, %v2679_v22  ;;  %v1190_v43 = vmul.f32 %v1994_v61, %v3159_v23  ;;  %v1298_v22 = vpack.c.bf16 %v2818_v13, %v1182_v44  ;;  %v3170_v50 = vld [vmem:[#allocation20_spill] sm:$0xff] }
 0x3ef   : > { %2001 = vrcp.f32 %v1098_v11  ;;  %v1107_v12 = vpop.xlane.xlu1 %1106  ;;  %1265 = vst [vmem:[%s2752_s3 + $0x158] sm:$0xff] %v2908_v3  ;;  %1264 = vst [vmem:[%s2752_s3 + $0x150] sm:$0xff] %v2911_v18 }
 0x3f0   : > { %2003 = vrcp.f32 %v1107_v12  ;;  %1255 = vst [vmem:[%s2752_s3 + $0x108] sm:$0xff] %v1191_v15  ;;  %1254 = vst [vmem:[%s2752_s3 + $0x100] sm:$0xff] %v1190_v43  ;;  %v1303_v2 = vpack.c.bf16 %v2861_v56, %v1191_v15  ;;  %v3168_v56 = vld [vmem:[#allocation19_spill] sm:$0xff]  ;;  %v1302_v21 = vpack.c.bf16 %v2864_v16, %v1190_v43 }
 0x3f1   : > { %v1996_v62 = vpop.eup %1995 }
 0x3f2   : > { %v1104_v48 = vpop.xlane.xlu0 %1103  ;;  %v1195_v27 = vmul.f32 %v1996_v62, %v3160_v35  ;;  %v1194_v0 = vmul.f32 %v1996_v62, %v3161_v49 }
 0x3f3   : > { %2005 = vrcp.f32 %v1104_v48 }
 0x3f4   : > { %v1998_v28 = vpop.eup %1997  ;;  %1259 = vst [vmem:[%s2752_s3 + $0x128] sm:$0xff] %v1195_v27  ;;  %1258 = vst [vmem:[%s2752_s3 + $0x120] sm:$0xff] %v1194_v0  ;;  %v1304_v11 = vpack.c.bf16 %v2891_v30, %v1194_v0 }
 0x3f5   : > { %v2000_v38 = vpop.eup %1999  ;;  %1399 = vmatmul.mubr.bf16.gmra.mrb[32].mxu0 %v1298_v22  ;;  %v1205_v9 = vmul.f32 %v1998_v28, %v3162_v39  ;;  %v1204_v26 = vmul.f32 %v1998_v28, %v3163_v24 }
 0x3f6   : > { %1406 = vmatprep.mubr.bf16.mxu0 %v1301_v51  ;;  %v1110_v58 = vpop.xlane.xlu0 %1109  ;;  %v1199_v13 = vmul.f32 %v2000_v38, %v2701_v55  ;;  %v1198_v46 = vmul.f32 %v2000_v38, %v3164_v4  ;;  %v1300_v55 = vpack.c.bf16 %v2834_v31, %v1186_v1  ;;  %v3167_v31 = vld [vmem:[#allocation15_spill] sm:$0xff]  ;;  %v1305_v1 = vpack.c.bf16 %v2888_v37, %v1195_v27 }
 0x3f7   : > { %1550 = vperm.xlu0 %1822, %v1750_v17   ;;  %2007 = vrcp.f32 %v1110_v58  ;;  %1269 = vst [vmem:[%s2752_s3 + $0x178] sm:$0xff] %v1205_v9  ;;  %1268 = vst [vmem:[%s2752_s3 + $0x170] sm:$0xff] %v1204_v26 }
 0x3f8   : > { %1263 = vst [vmem:[%s2752_s3 + $0x148] sm:$0xff] %v1199_v13  ;;  %1262 = vst [vmem:[%s2752_s3 + $0x140] sm:$0xff] %v1198_v46  ;;  %v1307_v15 = vpack.c.bf16 %v2908_v3, %v1199_v13  ;;  %v1306_v16 = vpack.c.bf16 %v2911_v18, %v1198_v46 }
 0x3f9   : > { %v2002_v45 = vpop.eup %2001 }
 0x3fa   : > { %v2004_v54 = vpop.eup %2003  ;;  %v1203_v53 = vmul.f32 %v2002_v45, %v2713_v52  ;;  %v1202_v34 = vmul.f32 %v2002_v45, %v2709_v25  ;;  %v3166_v25 = vld [vmem:[#allocation17_spill] sm:$0xff] }
 0x3fb   : > { %v1209_v8 = vmul.f32 %v2004_v54, %v2723_v33  ;;  %v1208_v7 = vmul.f32 %v2004_v54, %v3165_v63 }
 0x3fc   : > { %1267 = vst [vmem:[%s2752_s3 + $0x168] sm:$0xff] %v1203_v53  ;;  %1266 = vst [vmem:[%s2752_s3 + $0x160] sm:$0xff] %v1202_v34  ;;  %v1309_v37 = vpack.c.bf16 %v1205_v9, %v1203_v53  ;;  %v1308_v23 = vpack.c.bf16 %v1204_v26, %v1202_v34 }
 0x3fd   : > { %v2006_v29 = vpop.eup %2005  ;;  %1407 = vmatmul.mubr.bf16.gmra.mrb[36].mxu0 %v1300_v55  ;;  %v1116_v60 = vpop.xlane.xlu0 %1115  ;;  %1273 = vst [vmem:[%s2752_s3 + $0x198] sm:$0xff] %v1209_v8  ;;  %1272 = vst [vmem:[%s2752_s3 + $0x190] sm:$0xff] %v1208_v7 }
 0x3fe   : > { %1414 = vmatprep.mubr.bf16.mxu0 %v1303_v2  ;;  %2009 = vrcp.f32 %v1116_v60  ;;  %v1207_v52 = vmul.f32 %v2006_v29, %v3166_v25  ;;  %v1206_v44 = vmul.f32 %v2006_v29, %v3167_v31 }
 0x400   : > { %1271 = vst [vmem:[%s2752_s3 + $0x188] sm:$0xff] %v1207_v52  ;;  %1270 = vst [vmem:[%s2752_s3 + $0x180] sm:$0xff] %v1206_v44  ;;  %v1311_v43 = vpack.c.bf16 %v1209_v8, %v1207_v52 }
 0x401   : > { %v2008_v33 = vpop.eup %2007 }
 0x402   : > { %v1211_v57 = vmul.f32 %v2008_v33, %v3168_v56  ;;  %v1210_v40 = vmul.f32 %v2008_v33, %v3169_v42 }
 0x404   : > { %1275 = vst [vmem:[%s2752_s3 + $0x1a8] sm:$0xff] %v1211_v57  ;;  %1274 = vst [vmem:[%s2752_s3 + $0x1a0] sm:$0xff] %v1210_v40 }
 0x405   : > { %1415 = vmatmul.mubr.bf16.gmra.mrb[40].mxu0 %v1302_v21 }
 0x406   : > { %1422 = vmatprep.mubr.bf16.mxu0 %v1305_v1 }
 0x408   : > { %v2010_v14 = vpop.eup %2009 }
 0x409   : > { %v1215_v20 = vmul.f32 %v2010_v14, %v2741_v59  ;;  %v1214_v61 = vmul.f32 %v2010_v14, %v3170_v50  ;;  %v1310_v59 = vpack.c.bf16 %v1208_v7, %v1206_v44 }
 0x40b   : > { %1279 = vst [vmem:[%s2752_s3 + $0x1c8] sm:$0xff] %v1215_v20  ;;  %1278 = vst [vmem:[%s2752_s3 + $0x1c0] sm:$0xff] %v1214_v61 }
 0x40d   : > { %1423 = vmatmul.mubr.bf16.gmra.mrb[44].mxu0 %v1304_v11 }
 0x40e   : > { %1430 = vmatprep.mubr.bf16.mxu0 %v1307_v15 }
 0x415   : > { %1431 = vmatmul.mubr.bf16.gmra.mrb[48].mxu0 %v1306_v16 }
 0x416   : > { %1438 = vmatprep.mubr.bf16.mxu0 %v1309_v37 }
 0x41d   : > { %1439 = vmatmul.mubr.bf16.gmra.mrb[52].mxu0 %v1308_v23 }
 0x41e   : > { %1446 = vmatprep.mubr.bf16.mxu0 %v1311_v43 }
 0x425   : > { %1447 = vmatmul.mubr.bf16.gmra.mrb[56].mxu0 %v1310_v59 }
 0x466   : > { %v1113_v30 = vpop.xlane.xlu1 %1112 }
 0x467   : > { %2011 = vrcp.f32 %v1113_v30 }
 0x46a   : > { %v1119_v12 = vpop.xlane.xlu1 %1118 }
 0x46b   : > { %2013 = vrcp.f32 %v1119_v12 }
 0x46e   : > { %v1122_v3 = vpop.xlane.xlu0 %1121  ;;  %v1125_v62 = vpop.xlane.xlu1 %1124 }
 0x46f   : > { %2015 = vrcp.f32 %v1122_v3 }
 0x470   : > { %2017 = vrcp.f32 %v1125_v62 }
 0x471   : > { %v2012_v18 = vpop.eup %2011 }
 0x472   : > { %v1213_v48 = vmul.f32 %v2012_v18, %v2836_v47  ;;  %v1212_v35 = vmul.f32 %v2012_v18, %v2828_v32 }
 0x474   : > { %1277 = vst [vmem:[%s2752_s3 + $0x1b8] sm:$0xff] %v1213_v48  ;;  %v1313_v27 = vpack.c.bf16 %v1213_v48, %v1211_v57  ;;  %1276 = vst [vmem:[%s2752_s3 + $0x1b0] sm:$0xff] %v1212_v35  ;;  %v1312_v49 = vpack.c.bf16 %v1212_v35, %v1210_v40 }
 0x475   : > { %v2014_v0 = vpop.eup %2013 }
 0x476   : > { %1454 = vmatprep.mubr.bf16.mxu0 %v1313_v27  ;;  %v1217_v22 = vmul.f32 %v2014_v0, %v2844_v10  ;;  %v1216_v28 = vmul.f32 %v2014_v0, %v2826_v41 }
 0x477   : > { %1455 = vmatmul.mubr.bf16.gmra.mrb[60].mxu0 %v1312_v49 }
 0x478   : > { %1281 = vst [vmem:[%s2752_s3 + $0x1d8] sm:$0xff] %v1217_v22  ;;  %v1315_v51 = vpack.c.bf16 %v1217_v22, %v1215_v20  ;;  %1280 = vst [vmem:[%s2752_s3 + $0x1d0] sm:$0xff] %v1216_v28  ;;  %v1314_v58 = vpack.c.bf16 %v1216_v28, %v1214_v61  ;;  %v2978_v22 = vpop.permute.xlu0 %1550 }
 0x479   : > { %v2016_v47 = vpop.eup %2015  ;;  %v1352_v32 = vpop.f32.mrb[8].mxu0 }
 0x47a   : > { %v2018_v17 = vpop.eup %2017  ;;  %1462 = vmatprep.mubr.bf16.mxu0 %v1315_v51  ;;  %v1354_v38 = vpop.f32.mrb[9].mxu0  ;;  %1479 = vxpose.xlu1.b32.start [1/16] (narrow) %v1352_v32, 32  ;;  %v1219_v39 = vmul.f32 %v2016_v47, %v2866_v5  ;;  %v1218_v10 = vmul.f32 %v2016_v47, %v2858_v36  ;;  %v2019_v47 = vld [vmem:[%s2218_s16] sm:$0xff] }
 0x47b   : > { %v1355_v9 = vpop.f32.mrb[10].mxu0  ;;  %v1221_v41 = vmul.f32 %v2018_v17, %v2854_v19  ;;  %v1220_v24 = vmul.f32 %v2018_v17, %v2848_v6 }
 0x47c   : > { %v1357_v26 = vpop.f32.mrb[11].mxu0  ;;  %1283 = vst [vmem:[%s2752_s3 + $0x1e8] sm:$0xff] %v1219_v39  ;;  %1282 = vst [vmem:[%s2752_s3 + $0x1e0] sm:$0xff] %v1218_v10 }
 0x47d   : > { %1285 = vst [vmem:[%s2752_s3 + $0x1f8] sm:$0xff] %v1221_v41  ;;  %1284 = vst [vmem:[%s2752_s3 + $0x1f0] sm:$0xff] %v1220_v24  ;;  %v1317_v13 = vpack.c.bf16 %v1221_v41, %v1219_v39  ;;  %v1316_v45 = vpack.c.bf16 %v1220_v24, %v1218_v10  ;;  %v2020_v39 = vld [vmem:[%s2218_s16 + $0x10] sm:$0xff]  ;;  %v2021_v24 = vld [vmem:[%s2218_s16 + $0x20] sm:$0xff] }
 0x47e   : > { %1480 = vxpose.xlu1.b32.cont [2/16] (narrow) %v1355_v9, 32 }
 0x47f   : > { %1463 = vmatmul.mubr.bf16.gmra.mrb[64].mxu0 %v1314_v58 }
 0x480   : > { %1470 = vmatprep.mubr.bf16.mxu0 %v1317_v13 }
 0x481   : > { %v1360_v4 = vpop.f32.mrb[12].mxu0 }
 0x482   : > { %v1362_v46 = vpop.f32.mrb[13].mxu0  ;;  %1481 = vxpose.xlu1.b32.cont [3/16] (narrow) %v1360_v4, 32  ;;  %v2022_v4 = vld [vmem:[%s2218_s16 + $0x30] sm:$0xff] }
 0x483   : > { %v1363_v5 = vpop.f32.mrb[14].mxu0 }
 0x484   : > { %v1365_v36 = vpop.f32.mrb[15].mxu0 }
 0x486   : > { %1482 = vxpose.xlu1.b32.cont [4/16] (narrow) %v1363_v5, 32 }
 0x487   : > { %1471 = vmatmul.mubr.bf16.gmra.mrb[68].mxu0 %v1316_v45 }
 0x489   : > { %v1368_v19 = vpop.f32.mrb[16].mxu0 }
 0x48a   : > { %v1370_v6 = vpop.f32.mrb[17].mxu0  ;;  %1483 = vxpose.xlu1.b32.cont [5/16] (narrow) %v1368_v19, 32 }
 0x48b   : > { %v1371_v54 = vpop.f32.mrb[18].mxu0 }
 0x48c   : > { %v1373_v53 = vpop.f32.mrb[19].mxu0 }
 0x48e   : > { %1484 = vxpose.xlu1.b32.cont [6/16] (narrow) %v1371_v54, 32 }
 0x4b0   : > { %v1376_v34 = vpop.f32.mrb[20].mxu0 }
 0x4b1   : > { %v1378_v55 = vpop.f32.mrb[21].mxu0  ;;  %1485 = vxpose.xlu1.b32.cont [7/16] (narrow) %v1376_v34, 32 }
 0x4b2   : > { %v1379_v8 = vpop.f32.mrb[22].mxu0 }
 0x4b3   : > { %v1381_v63 = vpop.f32.mrb[23].mxu0 }
 0x4b5   : > { %1486 = vxpose.xlu1.b32.cont [8/16] (narrow) %v1379_v8, 32 }
 0x4b8   : > { %v1384_v7 = vpop.f32.mrb[24].mxu0 }
 0x4b9   : > { %1487 = vxpose.xlu1.b32.cont [9/16] (narrow) %v1384_v7, 32  ;;  %v1386_v2 = vpop.f32.mrb[25].mxu0 }
 0x4ba   : > { %v1387_v29 = vpop.f32.mrb[26].mxu0 }
 0x4bb   : > { %v1389_v60 = vpop.f32.mrb[27].mxu0 }
 0x4bd   : > { %1488 = vxpose.xlu1.b32.cont [10/16] (narrow) %v1387_v29, 32 }
 0x4c0   : > { %v1392_v25 = vpop.f32.mrb[28].mxu0 }
 0x4c1   : > { %1489 = vxpose.xlu1.b32.cont [11/16] (narrow) %v1392_v25, 32  ;;  %v1394_v52 = vpop.f32.mrb[29].mxu0 }
 0x4c2   : > { %v1395_v31 = vpop.f32.mrb[30].mxu0 }
 0x4c3   : > { %v1397_v44 = vpop.f32.mrb[31].mxu0 }
 0x4c5   : > { %1490 = vxpose.xlu1.b32.cont [12/16] (narrow) %v1395_v31, 32 }
 0x4c8   : > { %v1400_v33 = vpop.f32.mrb[32].mxu0 }
 0x4c9   : > { %1491 = vxpose.xlu1.b32.cont [13/16] (narrow) %v1400_v33, 32  ;;  %v1402_v56 = vpop.f32.mrb[33].mxu0 }
 0x4ca   : > { %v1403_v57 = vpop.f32.mrb[34].mxu0 }
 0x4cb   : > { %v1405_v42 = vpop.f32.mrb[35].mxu0 }
 0x4cd   : > { %1492 = vxpose.xlu1.b32.cont [14/16] (narrow) %v1403_v57, 32 }
 0x4d0   : > { %v1408_v40 = vpop.f32.mrb[36].mxu0 }
 0x4d1   : > { %1493 = vxpose.xlu1.b32.cont [15/16] (narrow) %v1408_v40, 32  ;;  %v1410_v21 = vpop.f32.mrb[37].mxu0 }
 0x4d2   : > { %v1411_v1 = vpop.f32.mrb[38].mxu0 }
 0x4d3   : > { %v1413_v14 = vpop.f32.mrb[39].mxu0 }
 0x4d5   : > { %1494 = vxpose.xlu1.b32.end [16/16] (narrow) %v1411_v1, 32 }
 0x4d8   : > { %v1416_v20 = vpop.f32.mrb[40].mxu0 }
 0x4d9   : > { %1511 = vxpose.xlu0.b32.start [1/16] (narrow) %v1416_v20, 32  ;;  %v1418_v50 = vpop.f32.mrb[41].mxu0 }
 0x4da   : > { %v1419_v61 = vpop.f32.mrb[42].mxu0 }
 0x4db   : > { %v1421_v11 = vpop.f32.mrb[43].mxu0 }
 0x4dd   : > { %1512 = vxpose.xlu0.b32.cont [2/16] (narrow) %v1419_v61, 32 }
 0x4e0   : > { %v1424_v15 = vpop.f32.mrb[44].mxu0 }
 0x4e1   : > { %1513 = vxpose.xlu0.b32.cont [3/16] (narrow) %v1424_v15, 32  ;;  %v1426_v16 = vpop.f32.mrb[45].mxu0 }
 0x4e2   : > { %v1427_v37 = vpop.f32.mrb[46].mxu0 }
 0x4e3   : > { %v1429_v23 = vpop.f32.mrb[47].mxu0 }
 0x4e5   : > { %1514 = vxpose.xlu0.b32.cont [4/16] (narrow) %v1427_v37, 32 }
 0x4e8   : > { %v1432_v43 = vpop.f32.mrb[48].mxu0 }
 0x4e9   : > { %1515 = vxpose.xlu0.b32.cont [5/16] (narrow) %v1432_v43, 32  ;;  %v1434_v59 = vpop.f32.mrb[49].mxu0 }
 0x4ea   : > { %v1435_v30 = vpop.f32.mrb[50].mxu0 }
 0x4eb   : > { %v1437_v12 = vpop.f32.mrb[51].mxu0 }
 0x4ed   : > { %1516 = vxpose.xlu0.b32.cont [6/16] (narrow) %v1435_v30, 32 }
 0x4f0   : > { %v1440_v3 = vpop.f32.mrb[52].mxu0 }
 0x4f1   : > { %1517 = vxpose.xlu0.b32.cont [7/16] (narrow) %v1440_v3, 32  ;;  %v1442_v62 = vpop.f32.mrb[53].mxu0 }
 0x4f2   : > { %v1443_v18 = vpop.f32.mrb[54].mxu0 }
 0x4f3   : > { %v1445_v48 = vpop.f32.mrb[55].mxu0 }
 0x4f5   : > { %1518 = vxpose.xlu0.b32.cont [8/16] (narrow) %v1443_v18, 32 }
 0x4f8   : > { %v1448_v35 = vpop.f32.mrb[56].mxu0 }
 0x4f9   : > { %1519 = vxpose.xlu0.b32.cont [9/16] (narrow) %v1448_v35, 32  ;;  %v1450_v27 = vpop.f32.mrb[57].mxu0 }
 0x4fa   : > { %v1451_v49 = vpop.f32.mrb[58].mxu0 }
 0x4fb   : > { %v1453_v0 = vpop.f32.mrb[59].mxu0 }
 0x4fd   : > { %1520 = vxpose.xlu0.b32.cont [10/16] (narrow) %v1451_v49, 32 }
 0x519   : > { %v1495_v28 = vpop.trf.xlu1 }
 0x51a   : > { %v1553_v51 = vmul.f32 %v2978_v22, %v1495_v28 }
 0x51c   : > { %v1561_v32 = vadd.f32 %v2019_v47, %v1553_v51 }
 0x51d   : > { %v1496_v17 = vpop.trf.xlu1 }
 0x51e   : > { %1569 = vst [vmem:[%s2986_s30] sm:$0xff] %v1561_v32  ;;  %v1555_v38 = vmul.f32 %v2978_v22, %v1496_v17 }
 0x520   : > { %v1563_v10 = vadd.f32 %v2020_v39, %v1555_v38 }
 0x521   : > { %v1497_v9 = vpop.trf.xlu1 }
 0x522   : > { %1571 = vst [vmem:[%s2986_s30 + $0x10] sm:$0xff] %v1563_v10  ;;  %v1557_v41 = vmul.f32 %v2978_v22, %v1497_v9 }
 0x524   : > { %v1565_v26 = vadd.f32 %v2021_v24, %v1557_v41 }
 0x525   : > { %v1498_v58 = vpop.trf.xlu1 }
 0x526   : > { %1573 = vst [vmem:[%s2986_s30 + $0x20] sm:$0xff] %v1565_v26  ;;  %v1559_v13 = vmul.f32 %v2978_v22, %v1498_v58 }
 0x528   : > { %v1567_v46 = vadd.f32 %v2022_v4, %v1559_v13 }
 0x52a   : > { %1575 = vst [vmem:[%s2986_s30 + $0x30] sm:$0xff] %v1567_v46 }
 0x52b   : > { %2040 = shalt.err (!%p2037_p5)
}
 0x52c   : > { %s2041_s18 = scalar_lea.hbm %s3003_s10, 8192  ;;  %s2045_s26 = scalar_lea.hbm %s3073_s5, 16384 }
 0x52d   : > { %p2042_p6 = scmp.ne.s32.totalorder %s3003_s10, %s2041_s18  ;;  %p2046_p10 = scmp.lt.u32.totalorder %s3003_s10, %s3073_s5 }
 0x52e   : > { %p2047_p11 = scmp.lt.u32.totalorder %s2045_s26, %s2041_s18  ;;  %p2049_p13 = scmp.lt.u32.totalorder %s2041_s18, %s3003_s10 }
 0x52f   : > { %p2043_p7 = pnand %p2042_p6, %p2184_p4 }
 0x530   : > { %p2048_p12 = por %p2047_p11, %p2046_p10 }
 0x531   : > { %p2044_p9 = pneg %p2043_p7 }
 0x532   : > { %p2050_p0 = por %p2049_p13, %p2048_p12 }
 0x534   : > { %p2051_p1 = pnand %p2050_p0, %p2044_p9 }
 0x536   : > { %2054 = shalt.err (!%p2051_p1)
}
 0x537   : > { %s2109_s11 = smov 256   ;;  %s2110_s9 = smov 16   ;;  %v2023_v60 = vld [vmem:[%s2218_s16 + $0x8] sm:$0xff]  ;;  %v2024_v44 = vld [vmem:[%s2218_s16 + $0x18] sm:$0xff] }
 0x538   : > { %1763 = dma.vmem_to_hbm [thread:$0]  (%p2184_p4), %s3006_s12, 8192, %s3003_s10, %s3010_s13, %s2109_s11, %s2109_s11, %s2110_s9  }
 0x539   : > { %v2025_v42 = vld [vmem:[%s2218_s16 + $0x28] sm:$0xff]  ;;  %v2026_v14 = vld [vmem:[%s2218_s16 + $0x38] sm:$0xff] }
 0x54a   : > { %v1456_v5 = vpop.f32.mrb[60].mxu0 }
 0x54b   : > { %1521 = vxpose.xlu0.b32.cont [11/16] (narrow) %v1456_v5, 32  ;;  %v1458_v36 = vpop.f32.mrb[61].mxu0 }
 0x54c   : > { %v1459_v45 = vpop.f32.mrb[62].mxu0 }
 0x54d   : > { %v1461_v19 = vpop.f32.mrb[63].mxu0 }
 0x54f   : > { %1522 = vxpose.xlu0.b32.cont [12/16] (narrow) %v1459_v45, 32 }
 0x552   : > { %v1464_v6 = vpop.f32.mrb[64].mxu0 }
 0x553   : > { %1523 = vxpose.xlu0.b32.cont [13/16] (narrow) %v1464_v6, 32  ;;  %v1466_v54 = vpop.f32.mrb[65].mxu0 }
 0x554   : > { %v1467_v53 = vpop.f32.mrb[66].mxu0 }
 0x555   : > { %v1469_v34 = vpop.f32.mrb[67].mxu0 }
 0x557   : > { %1524 = vxpose.xlu0.b32.cont [14/16] (narrow) %v1467_v53, 32 }
 0x55a   : > { %v1472_v55 = vpop.f32.mrb[68].mxu0 }
 0x55b   : > { %1525 = vxpose.xlu0.b32.cont [15/16] (narrow) %v1472_v55, 32  ;;  %v1474_v8 = vpop.f32.mrb[69].mxu0 }
 0x55c   : > { %v1475_v63 = vpop.f32.mrb[70].mxu0 }
 0x55d   : > { %v1477_v7 = vpop.f32.mrb[71].mxu0 }
 0x55f   : > { %1526 = vxpose.xlu0.b32.end [16/16] (narrow) %v1475_v63, 32 }
 0x5a3   : > { %v1527_v2 = vpop.trf.xlu0 }
 0x5a4   : > { %v1554_v29 = vmul.f32 %v2978_v22, %v1527_v2 }
 0x5a6   : > { %v1562_v25 = vadd.f32 %v2023_v60, %v1554_v29 }
 0x5a7   : > { %v1528_v52 = vpop.trf.xlu0 }
 0x5a8   : > { %1570 = vst [vmem:[%s2986_s30 + $0x8] sm:$0xff] %v1562_v25  ;;  %v1556_v31 = vmul.f32 %v2978_v22, %v1528_v52 }
 0x5aa   : > { %v1564_v33 = vadd.f32 %v2024_v44, %v1556_v31 }
 0x5ab   : > { %v1529_v56 = vpop.trf.xlu0 }
 0x5ac   : > { %1572 = vst [vmem:[%s2986_s30 + $0x18] sm:$0xff] %v1564_v33  ;;  %v1558_v57 = vmul.f32 %v2978_v22, %v1529_v56 }
 0x5ae   : > { %v1566_v40 = vadd.f32 %v2025_v42, %v1558_v57 }
 0x5af   : > { %v1530_v21 = vpop.trf.xlu0 }
 0x5b0   : > { %1574 = vst [vmem:[%s2986_s30 + $0x28] sm:$0xff] %v1566_v40  ;;  %v1560_v1 = vmul.f32 %v2978_v22, %v1530_v21 }
 0x5b2   : > { %v1568_v20 = vadd.f32 %v2026_v14, %v1560_v1 }
 0x5b4   : > { %1576 = vst [vmem:[%s2986_s30 + $0x38] sm:$0xff] %v1568_v20 }
 0x5b5 PF: > { %p1769_p4 = scmp.ge.s32.totalorder %s2105_s25, 2  ;;  %s1634_s29 = sand.u32 1, %s2085_s20  }
 0x5b6   : > { %s1635_s10 = scalar_lea.sflag [#allocation4], %s1634_s29 }
 0x5b7   : > { %p1766_p2 = pnand %p1769_p4, %p2191_p8 }
 0x5b9   : > { %2080 = dma.done.wait (!%p1766_p2), %s1635_s10, 8192  }
 0x5ba   : > { %2082 = vsyncadd (!%p1766_p2), %s1635_s10, 4294959104  ;;  %s21_s25 = sadd.s32 1, %s2105_s25   ;;  %s3171_s20 = smov %s2089_s21 }
 0x5bb   : > { %p18_p3 = scmp.ge.s32.totalorder %s21_s25, 4   ;;  %s3172_s21 = smov %s2093_s22 }
 0x5bc   : > { %s3173_s22 = smov %s2197_s7  ;;  %s3174_s23 = smov %s2101_s24 }
 0x5bd   : > { %s3175_s24 = smov %s3177_s27  ;;  %20 = sbr.rel (!%p18_p3) target bundleno = 7 (0x7), region = 83 }
 0x5c4   :  { %1640 = vsyncpa [#allocation4], 1 }
 0x5c5   :  { %1642 = vsyncpa [#allocation4 + $0x1], 1 }

</bundles_post_ra>
